<compile_context>
chip_gen: v7x
topology: tpu7x:2x2x1
jax: 0.10.0
libtpu: 0.0.40
codegen_flags: <defaults>
</compile_context>

<pallas_src>
import functools

import jax
import jax.numpy as jnp
from jax import lax
from jax.experimental import pallas as pl
from jax.experimental.pallas import tpu as pltpu


_HAS_BUFFERED = hasattr(pl, "Buffered")


def _round_up(x, m):
    return ((x + m - 1) // m) * m


def _pad2d(x, rows, cols):
    pr, pc = rows - x.shape[0], cols - x.shape[1]
    if pr == 0 and pc == 0:
        return x
    return jnp.pad(x, ((0, pr), (0, pc)))


def _vmem_capacity_bytes():
    try:
        return int(pltpu.get_tpu_info().vmem_capacity_bytes)
    except Exception:
        return 64 << 20  # conservative (v7x per-TC VMEM)


def _default_row_tile():
    # v7x: 64 MiB VMEM per TC -> 256 rows; v5e/v6e: 128 MiB -> 512 rows.
    return 256 if _vmem_capacity_bytes() <= (64 << 20) else 512


def _layer_norm(x, gamma, beta, eps):
    # Biased variance, matching torch.nn.LayerNorm.
    mu = jnp.mean(x, axis=-1, keepdims=True)
    xc = x - mu
    var = jnp.mean(xc * xc, axis=-1, keepdims=True)
    inv = lax.rsqrt(var + eps)          # EUP slot, effectively free next to VPU work
    return xc * inv * gamma + beta


def _uniter_img_emb_kernel(*refs, eps, mm_dtype, has_mask):
    if has_mask:
        (img_ref, mask_ref, memb_ref, pos_ref, typ_ref,
         w_img_ref, b_img_ref, w_pos_ref, b_pos_ref,
         g_im, be_im, g_pos, be_pos, g_f, be_f, out_ref) = refs
    else:
        (img_ref, pos_ref, typ_ref,
         w_img_ref, b_img_ref, w_pos_ref, b_pos_ref,
         g_im, be_im, g_pos, be_pos, g_f, be_f, out_ref) = refs

    # mask_embedding: padding_idx=0 row is zeroed by the module, so the lookup
    # is exactly mask * row1 (outer product broadcast, VPU).
    if has_mask:
        x = img_ref[...].astype(jnp.float32) + mask_ref[...] * memb_ref[...]
        x = x.astype(mm_dtype)
    else:
        x = img_ref[...].astype(mm_dtype)

    h_im = jnp.dot(x, w_img_ref[...], preferred_element_type=jnp.float32)
    h_im = _layer_norm(h_im + b_img_ref[...], g_im[...], be_im[...], eps)

    h_pos = jnp.dot(pos_ref[...].astype(mm_dtype), w_pos_ref[...],
                    preferred_element_type=jnp.float32)
    h_pos = _layer_norm(h_pos + b_pos_ref[...], g_pos[...], be_pos[...], eps)

    emb = h_im + h_pos + typ_ref[...].astype(jnp.float32)
    out_ref[...] = _layer_norm(emb, g_f[...], be_f[...], eps).astype(out_ref.dtype)


def uniter_image_embeddings(img_feat, img_pos_feat, type_embeddings, params,
                            img_masks=None, *, eps=1e-12, row_tile=None,
                            mm_dtype=jnp.bfloat16, out_dtype=None):
    """img_feat: (B, L, img_dim); img_pos_feat: (B, L, pos_dim);
    type_embeddings: (B, L, hidden); img_masks: optional (B, L) int {0,1}."""
    B, L, img_dim = img_feat.shape
    pos_dim = img_pos_feat.shape[-1]
    hidden = params["w_img"].shape[-1]
    N = B * L
    out_dtype = img_feat.dtype if out_dtype is None else out_dtype
    has_mask = img_masks is not None

    # --- row tiling: large, generation-aware tile; pad N so any B*L works ----
    if row_tile is None:
        row_tile = _default_row_tile()
    tm = _round_up(min(int(row_tile), _round_up(N, 8)), 8)
    # keep >= 2 grid steps when there is enough work (megacore / 2 TCs on v7x)
    if N >= 256 and _round_up(N, tm) // tm < 2:
        tm = _round_up(-(-N // 2), 8)
    n_pad = _round_up(N, tm)
    grid = n_pad // tm

    # --- contraction dims padded to lane width (128) -> lane-dense loads ----
    img_dim_p = _round_up(img_dim, 128)
    pos_dim_p = _round_up(pos_dim, 128)

    img2 = _pad2d(img_feat.reshape(N, img_dim), n_pad, img_dim_p)
    pos2 = _pad2d(img_pos_feat.reshape(N, pos_dim), n_pad, pos_dim_p)
    typ2 = _pad2d(type_embeddings.reshape(N, hidden), n_pad, hidden)

    # matmul weights in bf16 (half the VMEM, higher MXU throughput); bias/LN f32.
    w_img = _pad2d(params["w_img"], img_dim_p, hidden).astype(mm_dtype)
    w_pos = _pad2d(params["w_pos"], pos_dim_p, hidden).astype(mm_dtype)
    b_img = params["b_img"].astype(jnp.float32)
    b_pos = params["b_pos"].astype(jnp.float32)
    ln_params = [params[k].astype(jnp.float32)
                 for k in ("g_im", "be_im", "g_pos", "be_pos", "g_f", "be_f")]

    if has_mask:
        mask2 = _pad2d(img_masks.reshape(N, 1).astype(jnp.float32), n_pad, 1)
        maskemb = _pad2d(params["mask_emb_row1"].astype(jnp.float32), 1, img_dim_p)

    # --- VMEM budget estimate (worst case: everything double-buffered) ------
    def _bytes(shape, dt):
        n = 1
        for s in shape:
            n *= s
        return n * jnp.dtype(dt).itemsize

    est = 2 * (_bytes((tm, img_dim_p), img2.dtype)
               + _bytes((tm, pos_dim_p), pos2.dtype)
               + _bytes((tm, hidden), typ2.dtype)
               + _bytes((tm, hidden), out_dtype))
    if has_mask:
        est += 2 * _bytes((tm, 128), jnp.float32)  # (tm,1) block pads to 128 lanes
    est += 2 * (_bytes(w_img.shape, w_img.dtype) + _bytes(w_pos.shape, w_pos.dtype))
    est += 4 << 20  # headroom for small params / compiler scratch
    vmem_limit = None
    if est > (32 << 20):
        cap = _vmem_capacity_bytes()
        vmem_limit = int(min(max(est, 32 << 20), 0.9 * cap))

    def _call(single_buffer_params):
        def row_spec(d):
            return pl.BlockSpec((tm, d), lambda i: (i, 0))

        def const_spec(r, c):
            if single_buffer_params and _HAS_BUFFERED:
                # constant-index blocks: fetched once, no second buffer
                return pl.BlockSpec((r, c), lambda i: (0, 0),
                                    pipeline_mode=pl.Buffered(1))
            return pl.BlockSpec((r, c), lambda i: (0, 0))

        in_specs = [row_spec(img_dim_p)]
        args = [img2]
        if has_mask:
            in_specs += [row_spec(1), const_spec(1, img_dim_p)]
            args += [mask2, maskemb]
        in_specs += [row_spec(pos_dim_p), row_spec(hidden),
                     const_spec(img_dim_p, hidden), const_spec(1, hidden),
                     const_spec(pos_dim_p, hidden), const_spec(1, hidden)]
        args += [pos2, typ2, w_img, b_img, w_pos, b_pos]
        in_specs += [const_spec(1, hidden)] * 6
        args += ln_params

        kernel = functools.partial(_uniter_img_emb_kernel, eps=eps,
                                   mm_dtype=mm_dtype, has_mask=has_mask)
        return pl.pallas_call(
            kernel,
            out_shape=jax.ShapeDtypeStruct((n_pad, hidden), out_dtype),
            grid_spec=pltpu.PrefetchScalarGridSpec(
                num_scalar_prefetch=0,
                grid=(grid,),
                in_specs=in_specs,
                out_specs=pl.BlockSpec((tm, hidden), lambda i: (i, 0)),
            ),
            compiler_params=pltpu.CompilerParams(
                dimension_semantics=("parallel",),
                vmem_limit_bytes=vmem_limit),
        )(*args)

    if _HAS_BUFFERED:
        try:
            out = _call(True)
        except Exception:
            out = _call(False)   # fall back to default double buffering
    else:
        out = _call(False)

    return out[:N].reshape(B, L, hidden)


def _reference(img_feat, img_pos_feat, type_embeddings, params, img_masks, eps,
               mm_dtype=jnp.bfloat16):
    def ln(x, g, b):
        mu = jnp.mean(x, axis=-1, keepdims=True)
        var = jnp.mean((x - mu) ** 2, axis=-1, keepdims=True)
        return (x - mu) * lax.rsqrt(var + eps) * g + b

    x = img_feat.astype(jnp.float32)
    if img_masks is not None:
        x = x + img_masks[..., None].astype(jnp.float32) * params["mask_emb_row1"]
    h_im = jnp.dot(x.astype(mm_dtype), params["w_img"].astype(mm_dtype),
                   preferred_element_type=jnp.float32) + params["b_img"]
    h_im = ln(h_im, params["g_im"], params["be_im"])
    h_pos = jnp.dot(img_pos_feat.astype(mm_dtype), params["w_pos"].astype(mm_dtype),
                    preferred_element_type=jnp.float32) + params["b_pos"]
    h_pos = ln(h_pos, params["g_pos"], params["be_pos"])
    emb = h_im + h_pos + type_embeddings.astype(jnp.float32)
    return ln(emb, params["g_f"], params["be_f"])


def make_params(key, img_dim, pos_dim, hidden):
    ks = jax.random.split(key, 6)
    return {
        "w_img": jax.random.normal(ks[0], (img_dim, hidden), jnp.float32) * 0.02,
        "b_img": jax.random.normal(ks[1], (1, hidden), jnp.float32) * 0.02,
        "w_pos": jax.random.normal(ks[2], (pos_dim, hidden), jnp.float32) * 0.02,
        "b_pos": jax.random.normal(ks[3], (1, hidden), jnp.float32) * 0.02,
        # mask_embedding weight row 1 (row 0 is the zeroed padding row)
        "mask_emb_row1": jax.random.normal(ks[4], (1, img_dim), jnp.float32) * 0.02,
        # LayerNorms init like nn.LayerNorm: gamma=1, beta=0
        "g_im": jnp.ones((1, hidden), jnp.float32),
        "be_im": jnp.zeros((1, hidden), jnp.float32),
        "g_pos": jnp.ones((1, hidden), jnp.float32),
        "be_pos": jnp.zeros((1, hidden), jnp.float32),
        "g_f": jnp.ones((1, hidden), jnp.float32),
        "be_f": jnp.zeros((1, hidden), jnp.float32),
    }


if __name__ == "__main__":
    B, L = 2, 16
    IMG_DIM, POS_DIM, HIDDEN = 64, 7, 128
    EPS = 1e-12

    key = jax.random.PRNGKey(0)
    k1, k2, k3, k4, kp = jax.random.split(key, 5)

    img_feat = jax.random.normal(k1, (B, L, IMG_DIM), jnp.float32)
    img_pos_feat = jax.random.uniform(k2, (B, L, POS_DIM), jnp.float32)
    type_embeddings = jax.random.normal(k3, (B, L, HIDDEN), jnp.float32) * 0.1
    img_masks = (jax.random.uniform(k4, (B, L)) > 0.5).astype(jnp.int32)

    params = make_params(kp, IMG_DIM, POS_DIM, HIDDEN)

    # with mask
    out_m = uniter_image_embeddings(img_feat, img_pos_feat, type_embeddings,
                                    params, img_masks, eps=EPS)
    out_m = jax.block_until_ready(out_m)
    ref_m = _reference(img_feat, img_pos_feat, type_embeddings, params,
                       img_masks, EPS)

    # without mask (separate, mask-free kernel variant)
    out_n = uniter_image_embeddings(img_feat, img_pos_feat, type_embeddings,
                                    params, None, eps=EPS)
    out_n = jax.block_until_ready(out_n)
    ref_n = _reference(img_feat, img_pos_feat, type_embeddings, params,
                       None, EPS)

    assert out_m.shape == (B, L, HIDDEN)
    assert out_n.shape == (B, L, HIDDEN)
    assert jnp.allclose(out_m, ref_m, atol=2e-3, rtol=2e-3)
    assert jnp.allclose(out_n, ref_n, atol=2e-3, rtol=2e-3)
    print("KERNEL_OK")
</pallas_src>

<mosaic_0001>
module attributes {stable_mosaic.version = 11 : i64} {
  func.func @_uniter_img_emb_kernel(%arg0: i32, %arg1: memref<32x128xf32, #tpu.memory_space<vmem>>, %arg2: memref<32x1xf32, #tpu.memory_space<vmem>>, %arg3: memref<1x128xf32, #tpu.memory_space<vmem>>, %arg4: memref<32x128xf32, #tpu.memory_space<vmem>>, %arg5: memref<32x128xf32, #tpu.memory_space<vmem>>, %arg6: memref<128x128xbf16, #tpu.memory_space<vmem>>, %arg7: memref<1x128xf32, #tpu.memory_space<vmem>>, %arg8: memref<128x128xbf16, #tpu.memory_space<vmem>>, %arg9: memref<1x128xf32, #tpu.memory_space<vmem>>, %arg10: memref<1x128xf32, #tpu.memory_space<vmem>>, %arg11: memref<1x128xf32, #tpu.memory_space<vmem>>, %arg12: memref<1x128xf32, #tpu.memory_space<vmem>>, %arg13: memref<1x128xf32, #tpu.memory_space<vmem>>, %arg14: memref<1x128xf32, #tpu.memory_space<vmem>>, %arg15: memref<1x128xf32, #tpu.memory_space<vmem>>, %arg16: memref<32x128xf32, #tpu.memory_space<vmem>>) attributes {dimension_semantics = [#tpu.dimension_semantics<parallel>], iteration_bounds = array<i64: 1>, scalar_prefetch = 0 : i64, scratch_operands = 0 : i64, tpu.core_type = #tpu.core_type<tc>, window_params = [{transform_indices = @transform_0, window_bounds = array<i64: 32, 128>}, {transform_indices = @transform_1, window_bounds = array<i64: 32, 1>}, {pipeline_mode = #tpu.pipeline_mode<synchronous>, transform_indices = @transform_2, window_bounds = array<i64: 1, 128>}, {transform_indices = @transform_3, window_bounds = array<i64: 32, 128>}, {transform_indices = @transform_4, window_bounds = array<i64: 32, 128>}, {pipeline_mode = #tpu.pipeline_mode<synchronous>, transform_indices = @transform_5, window_bounds = array<i64: 128, 128>}, {pipeline_mode = #tpu.pipeline_mode<synchronous>, transform_indices = @transform_6, window_bounds = array<i64: 1, 128>}, {pipeline_mode = #tpu.pipeline_mode<synchronous>, transform_indices = @transform_7, window_bounds = array<i64: 128, 128>}, {pipeline_mode = #tpu.pipeline_mode<synchronous>, transform_indices = @transform_8, window_bounds = array<i64: 1, 128>}, {pipeline_mode = #tpu.pipeline_mode<synchronous>, transform_indices = @transform_9, window_bounds = array<i64: 1, 128>}, {pipeline_mode = #tpu.pipeline_mode<synchronous>, transform_indices = @transform_10, window_bounds = array<i64: 1, 128>}, {pipeline_mode = #tpu.pipeline_mode<synchronous>, transform_indices = @transform_11, window_bounds = array<i64: 1, 128>}, {pipeline_mode = #tpu.pipeline_mode<synchronous>, transform_indices = @transform_12, window_bounds = array<i64: 1, 128>}, {pipeline_mode = #tpu.pipeline_mode<synchronous>, transform_indices = @transform_13, window_bounds = array<i64: 1, 128>}, {pipeline_mode = #tpu.pipeline_mode<synchronous>, transform_indices = @transform_14, window_bounds = array<i64: 1, 128>}, {transform_indices = @transform_15, window_bounds = array<i64: 32, 128>}]} {
    %c0 = arith.constant 0 : index
    %c0_0 = arith.constant 0 : index
    %0 = vector.load %arg1[%c0, %c0_0] : memref<32x128xf32, #tpu.memory_space<vmem>>, vector<32x128xf32>
    %c0_1 = arith.constant 0 : index
    %c0_2 = arith.constant 0 : index
    %1 = vector.load %arg2[%c0_1, %c0_2] : memref<32x1xf32, #tpu.memory_space<vmem>>, vector<32x1xf32>
    %c0_3 = arith.constant 0 : index
    %c0_4 = arith.constant 0 : index
    %2 = vector.load %arg3[%c0_3, %c0_4] : memref<1x128xf32, #tpu.memory_space<vmem>>, vector<1x128xf32>
    %3 = vector.broadcast %1 : vector<32x1xf32> to vector<32x128xf32>
    %4 = vector.broadcast %2 : vector<1x128xf32> to vector<32x128xf32>
    %5 = arith.mulf %3, %4 : vector<32x128xf32>
    %6 = arith.addf %0, %5 : vector<32x128xf32>
    %7 = arith.truncf %6 : vector<32x128xf32> to vector<32x128xbf16>
    %c0_5 = arith.constant 0 : index
    %c0_6 = arith.constant 0 : index
    %8 = vector.load %arg6[%c0_5, %c0_6] : memref<128x128xbf16, #tpu.memory_space<vmem>>, vector<128x128xbf16>
    %cst = arith.constant dense<0.000000e+00> : vector<32x128xf32>
    %9 = tpu.matmul %7, %8, %cst {dimension_numbers = #tpu.dot_dimension_numbers<[1], [0], [0], [1], [0, 0, 1, 1], [], []>} : vector<32x128xbf16>, vector<128x128xbf16>, vector<32x128xf32> -> vector<32x128xf32>
    %c0_7 = arith.constant 0 : index
    %c0_8 = arith.constant 0 : index
    %10 = vector.load %arg7[%c0_7, %c0_8] : memref<1x128xf32, #tpu.memory_space<vmem>>, vector<1x128xf32>
    %11 = vector.broadcast %10 : vector<1x128xf32> to vector<32x128xf32>
    %12 = arith.addf %9, %11 : vector<32x128xf32>
    %c0_9 = arith.constant 0 : index
    %c0_10 = arith.constant 0 : index
    %13 = vector.load %arg10[%c0_9, %c0_10] : memref<1x128xf32, #tpu.memory_space<vmem>>, vector<1x128xf32>
    %c0_11 = arith.constant 0 : index
    %c0_12 = arith.constant 0 : index
    %14 = vector.load %arg11[%c0_11, %c0_12] : memref<1x128xf32, #tpu.memory_space<vmem>>, vector<1x128xf32>
    %cst_13 = arith.constant dense<0.000000e+00> : vector<32xf32>
    %15 = vector.multi_reduction <add>, %12, %cst_13 [1] : vector<32x128xf32> to vector<32xf32>
    %16 = vector.shape_cast %15 : vector<32xf32> to vector<32x1xf32>
    %cst_14 = arith.constant 1.280000e+02 : f32
    %17 = vector.broadcast %cst_14 : f32 to vector<32x1xf32>
    %18 = arith.divf %16, %17 : vector<32x1xf32>
    %19 = vector.broadcast %18 : vector<32x1xf32> to vector<32x128xf32>
    %20 = arith.subf %12, %19 : vector<32x128xf32>
    %21 = arith.mulf %20, %20 : vector<32x128xf32>
    %cst_15 = arith.constant dense<0.000000e+00> : vector<32xf32>
    %22 = vector.multi_reduction <add>, %21, %cst_15 [1] : vector<32x128xf32> to vector<32xf32>
    %23 = vector.shape_cast %22 : vector<32xf32> to vector<32x1xf32>
    %cst_16 = arith.constant 1.280000e+02 : f32
    %24 = vector.broadcast %cst_16 : f32 to vector<32x1xf32>
    %25 = arith.divf %23, %24 : vector<32x1xf32>
    %cst_17 = arith.constant 9.99999996E-13 : f32
    %26 = vector.broadcast %cst_17 : f32 to vector<32x1xf32>
    %27 = arith.addf %25, %26 : vector<32x1xf32>
    %28 = math.rsqrt %27 : vector<32x1xf32>
    %29 = vector.broadcast %28 : vector<32x1xf32> to vector<32x128xf32>
    %30 = arith.mulf %20, %29 : vector<32x128xf32>
    %31 = vector.broadcast %13 : vector<1x128xf32> to vector<32x128xf32>
    %32 = arith.mulf %30, %31 : vector<32x128xf32>
    %33 = vector.broadcast %14 : vector<1x128xf32> to vector<32x128xf32>
    %34 = arith.addf %32, %33 : vector<32x128xf32>
    %c0_18 = arith.constant 0 : index
    %c0_19 = arith.constant 0 : index
    %35 = vector.load %arg4[%c0_18, %c0_19] : memref<32x128xf32, #tpu.memory_space<vmem>>, vector<32x128xf32>
    %36 = arith.truncf %35 : vector<32x128xf32> to vector<32x128xbf16>
    %c0_20 = arith.constant 0 : index
    %c0_21 = arith.constant 0 : index
    %37 = vector.load %arg8[%c0_20, %c0_21] : memref<128x128xbf16, #tpu.memory_space<vmem>>, vector<128x128xbf16>
    %cst_22 = arith.constant dense<0.000000e+00> : vector<32x128xf32>
    %38 = tpu.matmul %36, %37, %cst_22 {dimension_numbers = #tpu.dot_dimension_numbers<[1], [0], [0], [1], [0, 0, 1, 1], [], []>} : vector<32x128xbf16>, vector<128x128xbf16>, vector<32x128xf32> -> vector<32x128xf32>
    %c0_23 = arith.constant 0 : index
    %c0_24 = arith.constant 0 : index
    %39 = vector.load %arg9[%c0_23, %c0_24] : memref<1x128xf32, #tpu.memory_space<vmem>>, vector<1x128xf32>
    %40 = vector.broadcast %39 : vector<1x128xf32> to vector<32x128xf32>
    %41 = arith.addf %38, %40 : vector<32x128xf32>
    %c0_25 = arith.constant 0 : index
    %c0_26 = arith.constant 0 : index
    %42 = vector.load %arg12[%c0_25, %c0_26] : memref<1x128xf32, #tpu.memory_space<vmem>>, vector<1x128xf32>
    %c0_27 = arith.constant 0 : index
    %c0_28 = arith.constant 0 : index
    %43 = vector.load %arg13[%c0_27, %c0_28] : memref<1x128xf32, #tpu.memory_space<vmem>>, vector<1x128xf32>
    %cst_29 = arith.constant dense<0.000000e+00> : vector<32xf32>
    %44 = vector.multi_reduction <add>, %41, %cst_29 [1] : vector<32x128xf32> to vector<32xf32>
    %45 = vector.shape_cast %44 : vector<32xf32> to vector<32x1xf32>
    %cst_30 = arith.constant 1.280000e+02 : f32
    %46 = vector.broadcast %cst_30 : f32 to vector<32x1xf32>
    %47 = arith.divf %45, %46 : vector<32x1xf32>
    %48 = vector.broadcast %47 : vector<32x1xf32> to vector<32x128xf32>
    %49 = arith.subf %41, %48 : vector<32x128xf32>
    %50 = arith.mulf %49, %49 : vector<32x128xf32>
    %cst_31 = arith.constant dense<0.000000e+00> : vector<32xf32>
    %51 = vector.multi_reduction <add>, %50, %cst_31 [1] : vector<32x128xf32> to vector<32xf32>
    %52 = vector.shape_cast %51 : vector<32xf32> to vector<32x1xf32>
    %cst_32 = arith.constant 1.280000e+02 : f32
    %53 = vector.broadcast %cst_32 : f32 to vector<32x1xf32>
    %54 = arith.divf %52, %53 : vector<32x1xf32>
    %cst_33 = arith.constant 9.99999996E-13 : f32
    %55 = vector.broadcast %cst_33 : f32 to vector<32x1xf32>
    %56 = arith.addf %54, %55 : vector<32x1xf32>
    %57 = math.rsqrt %56 : vector<32x1xf32>
    %58 = vector.broadcast %57 : vector<32x1xf32> to vector<32x128xf32>
    %59 = arith.mulf %49, %58 : vector<32x128xf32>
    %60 = vector.broadcast %42 : vector<1x128xf32> to vector<32x128xf32>
    %61 = arith.mulf %59, %60 : vector<32x128xf32>
    %62 = vector.broadcast %43 : vector<1x128xf32> to vector<32x128xf32>
    %63 = arith.addf %61, %62 : vector<32x128xf32>
    %64 = arith.addf %34, %63 : vector<32x128xf32>
    %c0_34 = arith.constant 0 : index
    %c0_35 = arith.constant 0 : index
    %65 = vector.load %arg5[%c0_34, %c0_35] : memref<32x128xf32, #tpu.memory_space<vmem>>, vector<32x128xf32>
    %66 = arith.addf %64, %65 : vector<32x128xf32>
    %c0_36 = arith.constant 0 : index
    %c0_37 = arith.constant 0 : index
    %67 = vector.load %arg14[%c0_36, %c0_37] : memref<1x128xf32, #tpu.memory_space<vmem>>, vector<1x128xf32>
    %c0_38 = arith.constant 0 : index
    %c0_39 = arith.constant 0 : index
    %68 = vector.load %arg15[%c0_38, %c0_39] : memref<1x128xf32, #tpu.memory_space<vmem>>, vector<1x128xf32>
    %cst_40 = arith.constant dense<0.000000e+00> : vector<32xf32>
    %69 = vector.multi_reduction <add>, %66, %cst_40 [1] : vector<32x128xf32> to vector<32xf32>
    %70 = vector.shape_cast %69 : vector<32xf32> to vector<32x1xf32>
    %cst_41 = arith.constant 1.280000e+02 : f32
    %71 = vector.broadcast %cst_41 : f32 to vector<32x1xf32>
    %72 = arith.divf %70, %71 : vector<32x1xf32>
    %73 = vector.broadcast %72 : vector<32x1xf32> to vector<32x128xf32>
    %74 = arith.subf %66, %73 : vector<32x128xf32>
    %75 = arith.mulf %74, %74 : vector<32x128xf32>
    %cst_42 = arith.constant dense<0.000000e+00> : vector<32xf32>
    %76 = vector.multi_reduction <add>, %75, %cst_42 [1] : vector<32x128xf32> to vector<32xf32>
    %77 = vector.shape_cast %76 : vector<32xf32> to vector<32x1xf32>
    %cst_43 = arith.constant 1.280000e+02 : f32
    %78 = vector.broadcast %cst_43 : f32 to vector<32x1xf32>
    %79 = arith.divf %77, %78 : vector<32x1xf32>
    %cst_44 = arith.constant 9.99999996E-13 : f32
    %80 = vector.broadcast %cst_44 : f32 to vector<32x1xf32>
    %81 = arith.addf %79, %80 : vector<32x1xf32>
    %82 = math.rsqrt %81 : vector<32x1xf32>
    %83 = vector.broadcast %82 : vector<32x1xf32> to vector<32x128xf32>
    %84 = arith.mulf %74, %83 : vector<32x128xf32>
    %85 = vector.broadcast %67 : vector<1x128xf32> to vector<32x128xf32>
    %86 = arith.mulf %84, %85 : vector<32x128xf32>
    %87 = vector.broadcast %68 : vector<1x128xf32> to vector<32x128xf32>
    %88 = arith.addf %86, %87 : vector<32x128xf32>
    %c0_45 = arith.constant 0 : index
    %c0_46 = arith.constant 0 : index
    %89 = vector.load %arg16[%c0_45, %c0_46] : memref<32x128xf32, #tpu.memory_space<vmem>>, vector<32x128xf32>
    tpu.vector_store %arg16[%c0_45, %c0_46], %88 {strides = array<i32>} : memref<32x128xf32, #tpu.memory_space<vmem>>, vector<32x128xf32>,
    return
  }
  func.func @transform_0(%arg0: i32) -> (i32, i32) {
    %c0_i32 = arith.constant 0 : i32
    %c0_i32_0 = arith.constant 0 : i32
    return %arg0, %c0_i32 : i32, i32
  }
  func.func @transform_1(%arg0: i32) -> (i32, i32) {
    %c0_i32 = arith.constant 0 : i32
    %c0_i32_0 = arith.constant 0 : i32
    return %arg0, %c0_i32 : i32, i32
  }
  func.func @transform_2(%arg0: i32) -> (i32, i32) {
    %c0_i32 = arith.constant 0 : i32
    %c0_i32_0 = arith.constant 0 : i32
    %c0_i32_1 = arith.constant 0 : i32
    return %c0_i32, %c0_i32_0 : i32, i32
  }
  func.func @transform_3(%arg0: i32) -> (i32, i32) {
    %c0_i32 = arith.constant 0 : i32
    %c0_i32_0 = arith.constant 0 : i32
    return %arg0, %c0_i32 : i32, i32
  }
  func.func @transform_4(%arg0: i32) -> (i32, i32) {
    %c0_i32 = arith.constant 0 : i32
    %c0_i32_0 = arith.constant 0 : i32
    return %arg0, %c0_i32 : i32, i32
  }
  func.func @transform_5(%arg0: i32) -> (i32, i32) {
    %c0_i32 = arith.constant 0 : i32
    %c0_i32_0 = arith.constant 0 : i32
    %c0_i32_1 = arith.constant 0 : i32
    return %c0_i32, %c0_i32_0 : i32, i32
  }
  func.func @transform_6(%arg0: i32) -> (i32, i32) {
    %c0_i32 = arith.constant 0 : i32
    %c0_i32_0 = arith.constant 0 : i32
    %c0_i32_1 = arith.constant 0 : i32
    return %c0_i32, %c0_i32_0 : i32, i32
  }
  func.func @transform_7(%arg0: i32) -> (i32, i32) {
    %c0_i32 = arith.constant 0 : i32
    %c0_i32_0 = arith.constant 0 : i32
    %c0_i32_1 = arith.constant 0 : i32
    return %c0_i32, %c0_i32_0 : i32, i32
  }
  func.func @transform_8(%arg0: i32) -> (i32, i32) {
    %c0_i32 = arith.constant 0 : i32
    %c0_i32_0 = arith.constant 0 : i32
    %c0_i32_1 = arith.constant 0 : i32
    return %c0_i32, %c0_i32_0 : i32, i32
  }
  func.func @transform_9(%arg0: i32) -> (i32, i32) {
    %c0_i32 = arith.constant 0 : i32
    %c0_i32_0 = arith.constant 0 : i32
    %c0_i32_1 = arith.constant 0 : i32
    return %c0_i32, %c0_i32_0 : i32, i32
  }
  func.func @transform_10(%arg0: i32) -> (i32, i32) {
    %c0_i32 = arith.constant 0 : i32
    %c0_i32_0 = arith.constant 0 : i32
    %c0_i32_1 = arith.constant 0 : i32
    return %c0_i32, %c0_i32_0 : i32, i32
  }
  func.func @transform_11(%arg0: i32) -> (i32, i32) {
    %c0_i32 = arith.constant 0 : i32
    %c0_i32_0 = arith.constant 0 : i32
    %c0_i32_1 = arith.constant 0 : i32
    return %c0_i32, %c0_i32_0 : i32, i32
  }
  func.func @transform_12(%arg0: i32) -> (i32, i32) {
    %c0_i32 = arith.constant 0 : i32
    %c0_i32_0 = arith.constant 0 : i32
    %c0_i32_1 = arith.constant 0 : i32
    return %c0_i32, %c0_i32_0 : i32, i32
  }
  func.func @transform_13(%arg0: i32) -> (i32, i32) {
    %c0_i32 = arith.constant 0 : i32
    %c0_i32_0 = arith.constant 0 : i32
    %c0_i32_1 = arith.constant 0 : i32
    return %c0_i32, %c0_i32_0 : i32, i32
  }
  func.func @transform_14(%arg0: i32) -> (i32, i32) {
    %c0_i32 = arith.constant 0 : i32
    %c0_i32_0 = arith.constant 0 : i32
    %c0_i32_1 = arith.constant 0 : i32
    return %c0_i32, %c0_i32_0 : i32, i32
  }
  func.func @transform_15(%arg0: i32) -> (i32, i32) {
    %c0_i32 = arith.constant 0 : i32
    %c0_i32_0 = arith.constant 0 : i32
    return %arg0, %c0_i32 : i32, i32
  }
}

module attributes {stable_mosaic.version = 11 : i64} {
  func.func @_uniter_img_emb_kernel(%arg0: i32, %arg1: memref<32x128xf32, #tpu.memory_space<vmem>>, %arg2: memref<32x1xf32, #tpu.memory_space<vmem>>, %arg3: memref<1x128xf32, #tpu.memory_space<vmem>>, %arg4: memref<32x128xf32, #tpu.memory_space<vmem>>, %arg5: memref<32x128xf32, #tpu.memory_space<vmem>>, %arg6: memref<128x128xbf16, #tpu.memory_space<vmem>>, %arg7: memref<1x128xf32, #tpu.memory_space<vmem>>, %arg8: memref<128x128xbf16, #tpu.memory_space<vmem>>, %arg9: memref<1x128xf32, #tpu.memory_space<vmem>>, %arg10: memref<1x128xf32, #tpu.memory_space<vmem>>, %arg11: memref<1x128xf32, #tpu.memory_space<vmem>>, %arg12: memref<1x128xf32, #tpu.memory_space<vmem>>, %arg13: memref<1x128xf32, #tpu.memory_space<vmem>>, %arg14: memref<1x128xf32, #tpu.memory_space<vmem>>, %arg15: memref<1x128xf32, #tpu.memory_space<vmem>>, %arg16: memref<32x128xf32, #tpu.memory_space<vmem>>) attributes {dimension_semantics = [#tpu.dimension_semantics<parallel>], iteration_bounds = array<i64: 1>, scalar_prefetch = 0 : i64, scratch_operands = 0 : i64, tpu.core_type = #tpu.core_type<tc>, window_params = [{transform_indices = @transform_0, window_bounds = array<i64: 32, 128>}, {transform_indices = @transform_1, window_bounds = array<i64: 32, 1>}, {pipeline_mode = #tpu.pipeline_mode<synchronous>, transform_indices = @transform_2, window_bounds = array<i64: 1, 128>}, {transform_indices = @transform_3, window_bounds = array<i64: 32, 128>}, {transform_indices = @transform_4, window_bounds = array<i64: 32, 128>}, {pipeline_mode = #tpu.pipeline_mode<synchronous>, transform_indices = @transform_5, window_bounds = array<i64: 128, 128>}, {pipeline_mode = #tpu.pipeline_mode<synchronous>, transform_indices = @transform_6, window_bounds = array<i64: 1, 128>}, {pipeline_mode = #tpu.pipeline_mode<synchronous>, transform_indices = @transform_7, window_bounds = array<i64: 128, 128>}, {pipeline_mode = #tpu.pipeline_mode<synchronous>, transform_indices = @transform_8, window_bounds = array<i64: 1, 128>}, {pipeline_mode = #tpu.pipeline_mode<synchronous>, transform_indices = @transform_9, window_bounds = array<i64: 1, 128>}, {pipeline_mode = #tpu.pipeline_mode<synchronous>, transform_indices = @transform_10, window_bounds = array<i64: 1, 128>}, {pipeline_mode = #tpu.pipeline_mode<synchronous>, transform_indices = @transform_11, window_bounds = array<i64: 1, 128>}, {pipeline_mode = #tpu.pipeline_mode<synchronous>, transform_indices = @transform_12, window_bounds = array<i64: 1, 128>}, {pipeline_mode = #tpu.pipeline_mode<synchronous>, transform_indices = @transform_13, window_bounds = array<i64: 1, 128>}, {pipeline_mode = #tpu.pipeline_mode<synchronous>, transform_indices = @transform_14, window_bounds = array<i64: 1, 128>}, {transform_indices = @transform_15, window_bounds = array<i64: 32, 128>}]} {
    %c0 = arith.constant 0 : index
    %c0_0 = arith.constant 0 : index
    %0 = vector.load %arg1[%c0, %c0_0] : memref<32x128xf32, #tpu.memory_space<vmem>>, vector<32x128xf32>
    %c0_1 = arith.constant 0 : index
    %c0_2 = arith.constant 0 : index
    %1 = vector.load %arg2[%c0_1, %c0_2] : memref<32x1xf32, #tpu.memory_space<vmem>>, vector<32x1xf32>
    %c0_3 = arith.constant 0 : index
    %c0_4 = arith.constant 0 : index
    %2 = vector.load %arg3[%c0_3, %c0_4] : memref<1x128xf32, #tpu.memory_space<vmem>>, vector<1x128xf32>
    %3 = vector.broadcast %1 : vector<32x1xf32> to vector<32x128xf32>
    %4 = vector.broadcast %2 : vector<1x128xf32> to vector<32x128xf32>
    %5 = arith.mulf %3, %4 : vector<32x128xf32>
    %6 = arith.addf %0, %5 : vector<32x128xf32>
    %7 = arith.truncf %6 : vector<32x128xf32> to vector<32x128xbf16>
    %c0_5 = arith.constant 0 : index
    %c0_6 = arith.constant 0 : index
    %8 = vector.load %arg6[%c0_5, %c0_6] : memref<128x128xbf16, #tpu.memory_space<vmem>>, vector<128x128xbf16>
    %cst = arith.constant dense<0.000000e+00> : vector<32x128xf32>
    %9 = tpu.matmul %7, %8, %cst {dimension_numbers = #tpu.dot_dimension_numbers<[1], [0], [0], [1], [0, 0, 1, 1], [], []>} : vector<32x128xbf16>, vector<128x128xbf16>, vector<32x128xf32> -> vector<32x128xf32>
    %c0_7 = arith.constant 0 : index
    %c0_8 = arith.constant 0 : index
    %10 = vector.load %arg7[%c0_7, %c0_8] : memref<1x128xf32, #tpu.memory_space<vmem>>, vector<1x128xf32>
    %11 = vector.broadcast %10 : vector<1x128xf32> to vector<32x128xf32>
    %12 = arith.addf %9, %11 : vector<32x128xf32>
    %c0_9 = arith.constant 0 : index
    %c0_10 = arith.constant 0 : index
    %13 = vector.load %arg10[%c0_9, %c0_10] : memref<1x128xf32, #tpu.memory_space<vmem>>, vector<1x128xf32>
    %c0_11 = arith.constant 0 : index
    %c0_12 = arith.constant 0 : index
    %14 = vector.load %arg11[%c0_11, %c0_12] : memref<1x128xf32, #tpu.memory_space<vmem>>, vector<1x128xf32>
    %cst_13 = arith.constant dense<0.000000e+00> : vector<32xf32>
    %15 = vector.multi_reduction <add>, %12, %cst_13 [1] : vector<32x128xf32> to vector<32xf32>
    %16 = vector.shape_cast %15 : vector<32xf32> to vector<32x1xf32>
    %cst_14 = arith.constant 1.280000e+02 : f32
    %17 = vector.broadcast %cst_14 : f32 to vector<32x1xf32>
    %18 = arith.divf %16, %17 : vector<32x1xf32>
    %19 = vector.broadcast %18 : vector<32x1xf32> to vector<32x128xf32>
    %20 = arith.subf %12, %19 : vector<32x128xf32>
    %21 = arith.mulf %20, %20 : vector<32x128xf32>
    %cst_15 = arith.constant dense<0.000000e+00> : vector<32xf32>
    %22 = vector.multi_reduction <add>, %21, %cst_15 [1] : vector<32x128xf32> to vector<32xf32>
    %23 = vector.shape_cast %22 : vector<32xf32> to vector<32x1xf32>
    %cst_16 = arith.constant 1.280000e+02 : f32
    %24 = vector.broadcast %cst_16 : f32 to vector<32x1xf32>
    %25 = arith.divf %23, %24 : vector<32x1xf32>
    %cst_17 = arith.constant 9.99999996E-13 : f32
    %26 = vector.broadcast %cst_17 : f32 to vector<32x1xf32>
    %27 = arith.addf %25, %26 : vector<32x1xf32>
    %28 = math.rsqrt %27 : vector<32x1xf32>
    %29 = vector.broadcast %28 : vector<32x1xf32> to vector<32x128xf32>
    %30 = arith.mulf %20, %29 : vector<32x128xf32>
    %31 = vector.broadcast %13 : vector<1x128xf32> to vector<32x128xf32>
    %32 = arith.mulf %30, %31 : vector<32x128xf32>
    %33 = vector.broadcast %14 : vector<1x128xf32> to vector<32x128xf32>
    %34 = arith.addf %32, %33 : vector<32x128xf32>
    %c0_18 = arith.constant 0 : index
    %c0_19 = arith.constant 0 : index
    %35 = vector.load %arg4[%c0_18, %c0_19] : memref<32x128xf32, #tpu.memory_space<vmem>>, vector<32x128xf32>
    %36 = arith.truncf %35 : vector<32x128xf32> to vector<32x128xbf16>
    %c0_20 = arith.constant 0 : index
    %c0_21 = arith.constant 0 : index
    %37 = vector.load %arg8[%c0_20, %c0_21] : memref<128x128xbf16, #tpu.memory_space<vmem>>, vector<128x128xbf16>
    %cst_22 = arith.constant dense<0.000000e+00> : vector<32x128xf32>
    %38 = tpu.matmul %36, %37, %cst_22 {dimension_numbers = #tpu.dot_dimension_numbers<[1], [0], [0], [1], [0, 0, 1, 1], [], []>} : vector<32x128xbf16>, vector<128x128xbf16>, vector<32x128xf32> -> vector<32x128xf32>
    %c0_23 = arith.constant 0 : index
    %c0_24 = arith.constant 0 : index
    %39 = vector.load %arg9[%c0_23, %c0_24] : memref<1x128xf32, #tpu.memory_space<vmem>>, vector<1x128xf32>
    %40 = vector.broadcast %39 : vector<1x128xf32> to vector<32x128xf32>
    %41 = arith.addf %38, %40 : vector<32x128xf32>
    %c0_25 = arith.constant 0 : index
    %c0_26 = arith.constant 0 : index
    %42 = vector.load %arg12[%c0_25, %c0_26] : memref<1x128xf32, #tpu.memory_space<vmem>>, vector<1x128xf32>
    %c0_27 = arith.constant 0 : index
    %c0_28 = arith.constant 0 : index
    %43 = vector.load %arg13[%c0_27, %c0_28] : memref<1x128xf32, #tpu.memory_space<vmem>>, vector<1x128xf32>
    %cst_29 = arith.constant dense<0.000000e+00> : vector<32xf32>
    %44 = vector.multi_reduction <add>, %41, %cst_29 [1] : vector<32x128xf32> to vector<32xf32>
    %45 = vector.shape_cast %44 : vector<32xf32> to vector<32x1xf32>
    %cst_30 = arith.constant 1.280000e+02 : f32
    %46 = vector.broadcast %cst_30 : f32 to vector<32x1xf32>
    %47 = arith.divf %45, %46 : vector<32x1xf32>
    %48 = vector.broadcast %47 : vector<32x1xf32> to vector<32x128xf32>
    %49 = arith.subf %41, %48 : vector<32x128xf32>
    %50 = arith.mulf %49, %49 : vector<32x128xf32>
    %cst_31 = arith.constant dense<0.000000e+00> : vector<32xf32>
    %51 = vector.multi_reduction <add>, %50, %cst_31 [1] : vector<32x128xf32> to vector<32xf32>
    %52 = vector.shape_cast %51 : vector<32xf32> to vector<32x1xf32>
    %cst_32 = arith.constant 1.280000e+02 : f32
    %53 = vector.broadcast %cst_32 : f32 to vector<32x1xf32>
    %54 = arith.divf %52, %53 : vector<32x1xf32>
    %cst_33 = arith.constant 9.99999996E-13 : f32
    %55 = vector.broadcast %cst_33 : f32 to vector<32x1xf32>
    %56 = arith.addf %54, %55 : vector<32x1xf32>
    %57 = math.rsqrt %56 : vector<32x1xf32>
    %58 = vector.broadcast %57 : vector<32x1xf32> to vector<32x128xf32>
    %59 = arith.mulf %49, %58 : vector<32x128xf32>
    %60 = vector.broadcast %42 : vector<1x128xf32> to vector<32x128xf32>
    %61 = arith.mulf %59, %60 : vector<32x128xf32>
    %62 = vector.broadcast %43 : vector<1x128xf32> to vector<32x128xf32>
    %63 = arith.addf %61, %62 : vector<32x128xf32>
    %64 = arith.addf %34, %63 : vector<32x128xf32>
    %c0_34 = arith.constant 0 : index
    %c0_35 = arith.constant 0 : index
    %65 = vector.load %arg5[%c0_34, %c0_35] : memref<32x128xf32, #tpu.memory_space<vmem>>, vector<32x128xf32>
    %66 = arith.addf %64, %65 : vector<32x128xf32>
    %c0_36 = arith.constant 0 : index
    %c0_37 = arith.constant 0 : index
    %67 = vector.load %arg14[%c0_36, %c0_37] : memref<1x128xf32, #tpu.memory_space<vmem>>, vector<1x128xf32>
    %c0_38 = arith.constant 0 : index
    %c0_39 = arith.constant 0 : index
    %68 = vector.load %arg15[%c0_38, %c0_39] : memref<1x128xf32, #tpu.memory_space<vmem>>, vector<1x128xf32>
    %cst_40 = arith.constant dense<0.000000e+00> : vector<32xf32>
    %69 = vector.multi_reduction <add>, %66, %cst_40 [1] : vector<32x128xf32> to vector<32xf32>
    %70 = vector.shape_cast %69 : vector<32xf32> to vector<32x1xf32>
    %cst_41 = arith.constant 1.280000e+02 : f32
    %71 = vector.broadcast %cst_41 : f32 to vector<32x1xf32>
    %72 = arith.divf %70, %71 : vector<32x1xf32>
    %73 = vector.broadcast %72 : vector<32x1xf32> to vector<32x128xf32>
    %74 = arith.subf %66, %73 : vector<32x128xf32>
    %75 = arith.mulf %74, %74 : vector<32x128xf32>
    %cst_42 = arith.constant dense<0.000000e+00> : vector<32xf32>
    %76 = vector.multi_reduction <add>, %75, %cst_42 [1] : vector<32x128xf32> to vector<32xf32>
    %77 = vector.shape_cast %76 : vector<32xf32> to vector<32x1xf32>
    %cst_43 = arith.constant 1.280000e+02 : f32
    %78 = vector.broadcast %cst_43 : f32 to vector<32x1xf32>
    %79 = arith.divf %77, %78 : vector<32x1xf32>
    %cst_44 = arith.constant 9.99999996E-13 : f32
    %80 = vector.broadcast %cst_44 : f32 to vector<32x1xf32>
    %81 = arith.addf %79, %80 : vector<32x1xf32>
    %82 = math.rsqrt %81 : vector<32x1xf32>
    %83 = vector.broadcast %82 : vector<32x1xf32> to vector<32x128xf32>
    %84 = arith.mulf %74, %83 : vector<32x128xf32>
    %85 = vector.broadcast %67 : vector<1x128xf32> to vector<32x128xf32>
    %86 = arith.mulf %84, %85 : vector<32x128xf32>
    %87 = vector.broadcast %68 : vector<1x128xf32> to vector<32x128xf32>
    %88 = arith.addf %86, %87 : vector<32x128xf32>
    %c0_45 = arith.constant 0 : index
    %c0_46 = arith.constant 0 : index
    %89 = vector.load %arg16[%c0_45, %c0_46] : memref<32x128xf32, #tpu.memory_space<vmem>>, vector<32x128xf32>
    tpu.vector_store %arg16[%c0_45, %c0_46], %88 {strides = array<i32>} : memref<32x128xf32, #tpu.memory_space<vmem>>, vector<32x128xf32>,
    return
  }
  func.func @transform_0(%arg0: i32) -> (i32, i32) {
    %c0_i32 = arith.constant 0 : i32
    %c0_i32_0 = arith.constant 0 : i32
    return %arg0, %c0_i32 : i32, i32
  }
  func.func @transform_1(%arg0: i32) -> (i32, i32) {
    %c0_i32 = arith.constant 0 : i32
    %c0_i32_0 = arith.constant 0 : i32
    return %arg0, %c0_i32 : i32, i32
  }
  func.func @transform_2(%arg0: i32) -> (i32, i32) {
    %c0_i32 = arith.constant 0 : i32
    %c0_i32_0 = arith.constant 0 : i32
    %c0_i32_1 = arith.constant 0 : i32
    return %c0_i32, %c0_i32_0 : i32, i32
  }
  func.func @transform_3(%arg0: i32) -> (i32, i32) {
    %c0_i32 = arith.constant 0 : i32
    %c0_i32_0 = arith.constant 0 : i32
    return %arg0, %c0_i32 : i32, i32
  }
  func.func @transform_4(%arg0: i32) -> (i32, i32) {
    %c0_i32 = arith.constant 0 : i32
    %c0_i32_0 = arith.constant 0 : i32
    return %arg0, %c0_i32 : i32, i32
  }
  func.func @transform_5(%arg0: i32) -> (i32, i32) {
    %c0_i32 = arith.constant 0 : i32
    %c0_i32_0 = arith.constant 0 : i32
    %c0_i32_1 = arith.constant 0 : i32
    return %c0_i32, %c0_i32_0 : i32, i32
  }
  func.func @transform_6(%arg0: i32) -> (i32, i32) {
    %c0_i32 = arith.constant 0 : i32
    %c0_i32_0 = arith.constant 0 : i32
    %c0_i32_1 = arith.constant 0 : i32
    return %c0_i32, %c0_i32_0 : i32, i32
  }
  func.func @transform_7(%arg0: i32) -> (i32, i32) {
    %c0_i32 = arith.constant 0 : i32
    %c0_i32_0 = arith.constant 0 : i32
    %c0_i32_1 = arith.constant 0 : i32
    return %c0_i32, %c0_i32_0 : i32, i32
  }
  func.func @transform_8(%arg0: i32) -> (i32, i32) {
    %c0_i32 = arith.constant 0 : i32
    %c0_i32_0 = arith.constant 0 : i32
    %c0_i32_1 = arith.constant 0 : i32
    return %c0_i32, %c0_i32_0 : i32, i32
  }
  func.func @transform_9(%arg0: i32) -> (i32, i32) {
    %c0_i32 = arith.constant 0 : i32
    %c0_i32_0 = arith.constant 0 : i32
    %c0_i32_1 = arith.constant 0 : i32
    return %c0_i32, %c0_i32_0 : i32, i32
  }
  func.func @transform_10(%arg0: i32) -> (i32, i32) {
    %c0_i32 = arith.constant 0 : i32
    %c0_i32_0 = arith.constant 0 : i32
    %c0_i32_1 = arith.constant 0 : i32
    return %c0_i32, %c0_i32_0 : i32, i32
  }
  func.func @transform_11(%arg0: i32) -> (i32, i32) {
    %c0_i32 = arith.constant 0 : i32
    %c0_i32_0 = arith.constant 0 : i32
    %c0_i32_1 = arith.constant 0 : i32
    return %c0_i32, %c0_i32_0 : i32, i32
  }
  func.func @transform_12(%arg0: i32) -> (i32, i32) {
    %c0_i32 = arith.constant 0 : i32
    %c0_i32_0 = arith.constant 0 : i32
    %c0_i32_1 = arith.constant 0 : i32
    return %c0_i32, %c0_i32_0 : i32, i32
  }
  func.func @transform_13(%arg0: i32) -> (i32, i32) {
    %c0_i32 = arith.constant 0 : i32
    %c0_i32_0 = arith.constant 0 : i32
    %c0_i32_1 = arith.constant 0 : i32
    return %c0_i32, %c0_i32_0 : i32, i32
  }
  func.func @transform_14(%arg0: i32) -> (i32, i32) {
    %c0_i32 = arith.constant 0 : i32
    %c0_i32_0 = arith.constant 0 : i32
    %c0_i32_1 = arith.constant 0 : i32
    return %c0_i32, %c0_i32_0 : i32, i32
  }
  func.func @transform_15(%arg0: i32) -> (i32, i32) {
    %c0_i32 = arith.constant 0 : i32
    %c0_i32_0 = arith.constant 0 : i32
    return %arg0, %c0_i32 : i32, i32
  }
}

</mosaic_0001>

<bundles_post_ra>
// kernel: tpu_custom_call.1
= control target key start
LH: loop header
LB: loop body
LE: loop exit
PB: predicated region body
PF: predicated region fallthrough
CT: control target
= control target key end

     0   :  { %20 = vsyncpa [#allocation3], 0  ;;  %s1139_s0 = inlined_call_operand.vmem [shape: f32[32,128], index: 0, kind: input, shape index: {}]   ;;  %s1140_s1 = inlined_call_operand.vmem [shape: f32[32,1], index: 1, kind: input, shape index: {}]   ;;  %s1141_s2 = inlined_call_operand.vmem [shape: f32[1,128], index: 2, kind: input, shape index: {}]   ;;  %s1142_s3 = inlined_call_operand.hbm [shape: f32[32,128], index: 3, kind: input, shape index: {}]   ;;  %s1143_s4 = inlined_call_operand.hbm [shape: f32[32,128], index: 4, kind: input, shape index: {}]   ;;  %s1144_s5 = inlined_call_operand.hbm [shape: bf16[128,128], index: 5, kind: input, shape index: {}]   ;;  %s1145_s6 = inlined_call_operand.vmem [shape: f32[1,128], index: 6, kind: input, shape index: {}]   ;;  %s1146_s7 = inlined_call_operand.hbm [shape: bf16[128,128], index: 7, kind: input, shape index: {}]   ;;  %s1147_s8 = inlined_call_operand.vmem [shape: f32[1,128], index: 8, kind: input, shape index: {}]   ;;  %s1148_s9 = inlined_call_operand.vmem [shape: f32[1,128], index: 9, kind: input, shape index: {}]   ;;  %s1149_s10 = inlined_call_operand.vmem [shape: f32[1,128], index: 10, kind: input, shape index: {}]   ;;  %s1150_s11 = inlined_call_operand.vmem [shape: f32[1,128], index: 11, kind: input, shape index: {}]   ;;  %s1151_s12 = inlined_call_operand.vmem [shape: f32[1,128], index: 12, kind: input, shape index: {}]   ;;  %s1152_s13 = inlined_call_operand.vmem [shape: f32[1,128], index: 13, kind: input, shape index: {}]   ;;  %s1153_s14 = inlined_call_operand.vmem [shape: f32[1,128], index: 14, kind: input, shape index: {}]   ;;  %s1154_s15 = inlined_call_operand.hbm [shape: f32[32,128], index: 15, kind: output, shape index: {}]  }
   0x1   :  { %21 = vsyncpa [#allocation6], 0 }
   0x2   :  { %22 = vsyncpa [#allocation9], 0 }
   0x3   :  { %23 = vsyncpa [#allocation4], 0  ;;  %s887_s18 = smov [#allocation5]   ;;  %s888_s20 = smov [#allocation2]  }
   0x4   :  { %s47_s19 = sshll.u32 %s887_s18, 4  ;;  %s35_s21 = sshll.u32 %s888_s20, 4  ;;  %s48_s19 = int_to_ptr.vmem [resolvable:$true] %s47_s19  ;;  %s977_s21 = int_to_ptr.vmem [resolvable:$true] %s35_s21 }
   0x5   :  { %s769_s24 = scalar_lea.hbm %s1143_s4, 512 }
   0x6   :  { %p770_p0 = scmp.ne.s32.totalorder %s1143_s4, %s769_s24  ;;  %p773_p1 = scmp.lt.u32.totalorder %s769_s24, %s1143_s4 }
   0x8   :  { %p775_p2 = pnand %p773_p1, %p770_p0 }
   0xa   :  { %778 = shalt.err (!%p775_p2)
}
   0xb   :  { %s779_s29 = scalar_lea.vmem %s48_s19, 512  ;;  %p784_p4 = scmp.lt.s32.totalorder %s48_s19, %s48_s19 }
   0xc   :  { %p780_p3 = scmp.ne.s32.totalorder %s48_s19, %s779_s29  ;;  %p785_p5 = scmp.lt.s32.totalorder %s779_s29, %s779_s29 }
   0xe   :  { %p786_p6 = por %p785_p5, %p784_p4 }
  0x10   :  { %p787_p7 = pnand %p786_p6, %p780_p3 }
  0x12   :  { %790 = shalt.err (!%p787_p7)
}
  0x13   :  { %s889_s30 = smov 128   ;;  %s890_s16 = smov 8  }
  0x14   :  { %53 = dma.hbm_to_vmem [thread:$0]  %s1143_s4, 512, %s48_s19, [#allocation6], %s889_s30, %s889_s30, %s890_s16  }
  0x15   :  { %s791_s23 = scalar_lea.hbm %s1142_s3, 512 }
  0x16   :  { %p792_p8 = scmp.ne.s32.totalorder %s1142_s3, %s791_s23  ;;  %p795_p9 = scmp.lt.u32.totalorder %s791_s23, %s1142_s3 }
  0x18   :  { %p797_p10 = pnand %p795_p9, %p792_p8 }
  0x1a   :  { %800 = shalt.err (!%p797_p10)
}
  0x1b   :  { %s801_s28 = scalar_lea.vmem %s977_s21, 512  ;;  %p806_p12 = scmp.lt.s32.totalorder %s977_s21, %s977_s21 }
  0x1c   :  { %p802_p11 = scmp.ne.s32.totalorder %s977_s21, %s801_s28  ;;  %p807_p13 = scmp.lt.s32.totalorder %s801_s28, %s801_s28 }
  0x1e   :  { %p808_p0 = por %p807_p13, %p806_p12 }
  0x20   :  { %p809_p1 = pnand %p808_p0, %p802_p11 }
  0x22   :  { %812 = shalt.err (!%p809_p1)
}
  0x23   :  { %41 = dma.hbm_to_vmem [thread:$0]  %s1142_s3, 512, %s977_s21, [#allocation3], %s889_s30, %s889_s30, %s890_s16  }
  0x24   :  { %s891_s29 = smov [#allocation7]   ;;  %s813_s22 = scalar_lea.hbm %s1144_s5, 1024 }
  0x25   :  { %s59_s17 = sshll.u32 %s891_s29, 4  ;;  %p814_p2 = scmp.ne.s32.totalorder %s1144_s5, %s813_s22  ;;  %s60_s17 = int_to_ptr.vmem [resolvable:$true] %s59_s17 }
  0x26   :  { %p817_p3 = scmp.lt.u32.totalorder %s813_s22, %s1144_s5 }
  0x28   :  { %p819_p4 = pnand %p817_p3, %p814_p2 }
  0x2a   :  { %822 = shalt.err (!%p819_p4)
}
  0x2b   :  { %s823_s27 = scalar_lea.vmem %s60_s17, 1024  ;;  %p828_p6 = scmp.lt.s32.totalorder %s60_s17, %s60_s17 }
  0x2c   :  { %p824_p5 = scmp.ne.s32.totalorder %s60_s17, %s823_s27  ;;  %p829_p7 = scmp.lt.s32.totalorder %s823_s27, %s823_s27 }
  0x2e   :  { %p830_p8 = por %p829_p7, %p828_p6 }
  0x30   :  { %p831_p9 = pnand %p830_p8, %p824_p5 }
  0x32   :  { %834 = shalt.err (!%p831_p9)
}
  0x33   :  { %s892_s3 = smov 64   ;;  %s893_s21 = smov 4  }
  0x34   :  { %65 = dma.hbm_to_vmem [thread:$0]  %s1144_s5, 1024, %s60_s17, [#allocation6], %s892_s3, %s892_s3, %s893_s21  }
  0x35   :  { %s894_s19 = smov [#allocation8]   ;;  %s835_s22 = scalar_lea.hbm %s1146_s7, 1024 }
  0x36   :  { %s73_s29 = sshll.u32 %s894_s19, 4  ;;  %p836_p10 = scmp.ne.s32.totalorder %s1146_s7, %s835_s22  ;;  %s74_s29 = int_to_ptr.vmem [resolvable:$true] %s73_s29 }
  0x37   :  { %p839_p11 = scmp.lt.u32.totalorder %s835_s22, %s1146_s7 }
  0x39   :  { %p841_p12 = pnand %p839_p11, %p836_p10 }
  0x3b   :  { %844 = shalt.err (!%p841_p12)
}
  0x3c   :  { %s845_s27 = scalar_lea.vmem %s74_s29, 1024  ;;  %p850_p0 = scmp.lt.s32.totalorder %s74_s29, %s74_s29 }
  0x3d   :  { %p846_p13 = scmp.ne.s32.totalorder %s74_s29, %s845_s27  ;;  %p851_p1 = scmp.lt.s32.totalorder %s845_s27, %s845_s27 }
  0x3f   :  { %p852_p2 = por %p851_p1, %p850_p0 }
  0x41   :  { %p853_p3 = pnand %p852_p2, %p846_p13 }
  0x43   :  { %856 = shalt.err (!%p853_p3)
}
  0x44   :  { %79 = dma.hbm_to_vmem [thread:$0]  %s1146_s7, 1024, %s74_s29, [#allocation9], %s892_s3, %s892_s3, %s893_s21  }
  0x45   :  { %879 = dma.done.wait [#allocation3], 512  }
  0x46   :  { %880 = vsyncadd [#allocation3], 4294966784 }
  0x47   :  { %881 = dma.done.wait [#allocation6], 1536  }
  0x48   :  { %882 = vsyncadd [#allocation6], 4294965760 }
  0x49   :  { %883 = dma.done.wait [#allocation9], 1024  }
  0x4a   :  { %884 = vsyncadd [#allocation9], 4294966272  ;;  %v895_v0 = vmov 0   ;;  %v113_v1 = vld [vmem:[%s1140_s1 + $0x10] sm:$0xff]  ;;  %v111_v2 = vld [vmem:[%s1140_s1] sm:$0xff] }
  0x4b   :  { %728 = vset.pattern.permute.xlu1 %v895_v0  ;;  %727 = vset.pattern.permute.xlu0 %v895_v0  ;;  %v729_v3 = vld [vmem:[#allocation8] sm:$0xff]   ;;  %v114_v4 = vld [vmem:[%s1140_s1 + $0x18] sm:$0xff]  ;;  %v112_v5 = vld [vmem:[%s1140_s1 + $0x8] sm:$0xff] }
  0x4c   :  { %128 = vperm.xlu1 %728, %v113_v1   ;;  %118 = vperm.xlu0 %727, %v111_v2   ;;  %v730_v6 = vld [vmem:[#allocation8 + $0x8] sm:$0xff]   ;;  %v731_v7 = vld [vmem:[#allocation8 + $0x10] sm:$0xff]   ;;  %v732_v8 = vld [vmem:[#allocation8 + $0x18] sm:$0xff]  }
  0x4d   :  { %697 = vmatprep.subr.bf16.mxu1 %v729_v3  ;;  %v339_v9 = vld [vmem:[#allocation2] sm:$0xff]  ;;  %v340_v10 = vld [vmem:[#allocation2 + $0x8] sm:$0xff]  ;;  %v739_v15 = vld [vmem:[#allocation7 + $0x10] sm:$0xff]  }
  0x4e   :  { %698 = vmatpush3.bf16.msra.mxu1 %v729_v3  ;;  %v343_v11 = vpack.c.bf16 %v340_v10, %v339_v9  ;;  %v737_v12 = vld [vmem:[#allocation7] sm:$0xff]   ;;  %v738_v13 = vld [vmem:[#allocation7 + $0x8] sm:$0xff]   ;;  %v740_v17 = vld [vmem:[#allocation7 + $0x18] sm:$0xff]  }
  0x4f   :  { %699 = vmatprep.subr.bf16.mxu1 %v730_v6  ;;  %v733_v14 = vld [vmem:[#allocation8 + $0x20] sm:$0xff]   ;;  %677 = vmatprep.subr.bf16.mxu0 %v737_v12  ;;  %v734_v16 = vld [vmem:[#allocation8 + $0x28] sm:$0xff]   ;;  %v735_v18 = vld [vmem:[#allocation8 + $0x30] sm:$0xff]  }
  0x50   :  { %133 = vperm.xlu1 %728, %v114_v4   ;;  %123 = vperm.xlu0 %727, %v112_v5   ;;  %v741_v19 = vld [vmem:[#allocation7 + $0x20] sm:$0xff]   ;;  %v736_v20 = vld [vmem:[#allocation8 + $0x38] sm:$0xff]   ;;  %v742_v21 = vld [vmem:[#allocation7 + $0x28] sm:$0xff]  }
  0x51   :  { %713 = vmatprep.mubr.bf16.mxu1 %v343_v11  ;;  %678 = vmatpush3.bf16.msra.mxu0 %v737_v12  ;;  %v341_v22 = vld [vmem:[#allocation2 + $0x10] sm:$0xff]  ;;  %v342_v23 = vld [vmem:[#allocation2 + $0x18] sm:$0xff]  ;;  %v632_v27 = vld [vmem:[%s1141_s2] ss:$0 sm:$0xff] }
  0x52   :  { %700 = vmatpush3.bf16.msra.mxu1 %v730_v6  ;;  %679 = vmatprep.subr.bf16.mxu0 %v738_v13  ;;  %v344_v24 = vpack.c.bf16 %v342_v23, %v341_v22  ;;  %v743_v25 = vld [vmem:[#allocation7 + $0x30] sm:$0xff]   ;;  %v744_v26 = vld [vmem:[#allocation7 + $0x38] sm:$0xff]   ;;  %v107_v36 = vld [vmem:[%s1139_s0] sm:$0xff] }
  0x53   :  { %701 = vmatprep.subr.bf16.mxu1 %v731_v7  ;;  %v109_v30 = vld [vmem:[%s1139_s0 + $0x10] sm:$0xff]  ;;  %v110_v34 = vld [vmem:[%s1139_s0 + $0x18] sm:$0xff]  ;;  %v108_v37 = vld [vmem:[%s1139_s0 + $0x8] sm:$0xff] }
  0x54   :  { %v644_v46 = vld [vmem:[%s1147_s8] ss:$0 sm:$0xff] }
  0x55   :  { %680 = vmatpush3.bf16.msra.mxu0 %v738_v13  ;;  %v633_v55 = vld [vmem:[%s1145_s6] ss:$0 sm:$0xff] }
  0x56   :  { %702 = vmatpush3.bf16.msra.mxu1 %v731_v7  ;;  %681 = vmatprep.subr.bf16.mxu0 %v739_v15 }
  0x57   :  { %703 = vmatprep.subr.bf16.mxu1 %v732_v8 }
  0x59   :  { %682 = vmatpush3.bf16.msra.mxu0 %v739_v15 }
  0x5a   :  { %704 = vmatpush3.bf16.msra.mxu1 %v732_v8  ;;  %683 = vmatprep.subr.bf16.mxu0 %v740_v17 }
  0x5b   :  { %705 = vmatprep.subr.bf16.mxu1 %v733_v14 }
  0x5d   :  { %684 = vmatpush3.bf16.msra.mxu0 %v740_v17 }
  0x5e   :  { %706 = vmatpush3.bf16.msra.mxu1 %v733_v14  ;;  %685 = vmatprep.subr.bf16.mxu0 %v741_v19 }
  0x5f   :  { %707 = vmatprep.subr.bf16.mxu1 %v734_v16 }
  0x61   :  { %686 = vmatpush3.bf16.msra.mxu0 %v741_v19 }
  0x62   :  { %708 = vmatpush3.bf16.msra.mxu1 %v734_v16  ;;  %687 = vmatprep.subr.bf16.mxu0 %v742_v21 }
  0x63   :  { %709 = vmatprep.subr.bf16.mxu1 %v735_v18 }
  0x65   :  { %688 = vmatpush3.bf16.msra.mxu0 %v742_v21 }
  0x66   :  { %710 = vmatpush3.bf16.msra.mxu1 %v735_v18  ;;  %689 = vmatprep.subr.bf16.mxu0 %v743_v25 }
  0x67   :  { %711 = vmatprep.subr.bf16.mxu1 %v736_v20 }
  0x69   :  { %690 = vmatpush3.bf16.msra.mxu0 %v743_v25 }
  0x6a   :  { %712 = vmatpush3.bf16.msra.mxu1 %v736_v20  ;;  %691 = vmatprep.subr.bf16.mxu0 %v744_v26 }
  0x6d   :  { %714 = vmatmul.mubr.bf16.vlgmr.msra.gmra.mrb[0].mxu1 %v344_v24  ;;  %692 = vmatpush3.bf16.msra.mxu0 %v744_v26 }
  0xcb   :  { %v129_v28 = vpop.permute.xlu1 %128  ;;  %v119_v29 = vpop.permute.xlu0 %118 }
  0xcc   :  { %v144_v31 = vmul.f32 %v632_v27, %v129_v28  ;;  %v142_v32 = vmul.f32 %v632_v27, %v119_v29 }
  0xce   :  { %v148_v40 = vadd.f32 %v144_v31, %v109_v30  ;;  %v146_v42 = vadd.f32 %v142_v32, %v107_v36 }
  0xcf   :  { %v134_v33 = vpop.permute.xlu1 %133  ;;  %v124_v35 = vpop.permute.xlu0 %123 }
  0xd0   :  { %v145_v38 = vmul.f32 %v632_v27, %v134_v33  ;;  %v143_v39 = vmul.f32 %v632_v27, %v124_v35 }
  0xd2   :  { %v149_v41 = vadd.f32 %v145_v38, %v110_v34  ;;  %v147_v43 = vadd.f32 %v143_v39, %v108_v37 }
  0xd4   :  { %v150_v44 = vpack.c.bf16 %v147_v43, %v146_v42  ;;  %v151_v45 = vpack.c.bf16 %v149_v41, %v148_v40 }
  0xd6   :  { %693 = vmatprep.mubr.bf16.mxu0 %v150_v44 }
  0xd7   :  { %694 = vmatmul.mubr.bf16.vlgmr.msra.gmra.mrb[0].mxu0 %v151_v45 }
 0x140   :  { %v715_v47 = vpop.f32.mrb[0].mxu1 }
 0x141   :  { %v459_v48 = vadd.f32 %v715_v47, %v644_v46  ;;  %v450_v49 = vpop.f32.mrb[1].mxu1 }
 0x142   :  { %v451_v50 = vadd.f32 %v644_v46, %v450_v49  ;;  %v716_v51 = vpop.f32.mrb[2].mxu1 }
 0x143   :  { %v462_v52 = vadd.f32 %v716_v51, %v644_v46  ;;  %v453_v53 = vpop.f32.mrb[3].mxu1 }
 0x144   :  { %v454_v54 = vadd.f32 %v644_v46, %v453_v53  ;;  %467 = vadd.xlane.f32.xlu1 %v451_v50 }
 0x146   :  { %469 = vadd.xlane.f32.xlu0 %v454_v54 }
 0x1aa   :  { %v695_v56 = vpop.f32.mrb[0].mxu0 }
 0x1ab   :  { %v266_v57 = vadd.f32 %v695_v56, %v633_v55  ;;  %v257_v58 = vpop.f32.mrb[1].mxu0 }
 0x1ac   :  { %v696_v59 = vpop.f32.mrb[2].mxu0  ;;  %v258_v62 = vadd.f32 %v633_v55, %v257_v58  ;;  %v653_v58 = vld [vmem:[%s1150_s11] ss:$0 sm:$0xff] }
 0x1ad   :  { %278 = vadd.xlane.f32.xlu0 %v266_v57  ;;  %v260_v60 = vpop.f32.mrb[3].mxu0  ;;  %v269_v63 = vadd.f32 %v696_v59, %v633_v55 }
 0x1ae   :  { %v261_v61 = vadd.f32 %v633_v55, %v260_v60 }
 0x1b0   :  { %276 = vadd.xlane.f32.xlu1 %v261_v61 }
 0x1b1   :  { %274 = vadd.xlane.f32.xlu0 %v258_v62 }
 0x1b4   :  { %471 = vadd.xlane.f32.xlu1 %v459_v48 }
 0x1b5   :  { %280 = vadd.xlane.f32.xlu0 %v269_v63 }
 0x1b9   :  { %473 = vadd.xlane.f32.xlu0 %v462_v52 }
 0x1d1   :  { %v468_v0 = vpop.xlane.xlu1 %467 }
 0x1d2   :  { %v475_v1 = vmul.f32 0.0078125, %v468_v0 }
 0x1d3   :  { %v470_v2 = vpop.xlane.xlu0 %469 }
 0x1d4   :  { %v1071_v3 = vsub.f32 %v451_v50, %v475_v1  ;;  %v476_v4 = vmul.f32 0.0078125, %v470_v2  ;;  %v654_v2 = vld [vmem:[%s1151_s12] ss:$0 sm:$0xff] }
 0x1d6   :  { %v1073_v5 = vsub.f32 %v454_v54, %v476_v4  ;;  %v483_v6 = vmul.f32 %v1071_v3, %v1071_v3 }
 0x1d8   :  { %487 = vadd.xlane.f32.xlu1 %v483_v6  ;;  %v484_v7 = vmul.f32 %v1073_v5, %v1073_v5  ;;  %v643_v6 = vld [vmem:[%s1149_s10] ss:$0 sm:$0xff] }
 0x1da   :  { %489 = vadd.xlane.f32.xlu0 %v484_v7 }
 0x23a   :  { %v279_v8 = vpop.xlane.xlu0 %278 }
 0x23b   :  { %v285_v9 = vmul.f32 0.0078125, %v279_v8 }
 0x23d   :  { %v1079_v10 = vsub.f32 %v266_v57, %v285_v9  ;;  %v277_v11 = vpop.xlane.xlu1 %276 }
 0x23e   :  { %v275_v12 = vpop.xlane.xlu0 %274  ;;  %v284_v19 = vmul.f32 0.0078125, %v277_v11 }
 0x23f   :  { %v283_v13 = vmul.f32 0.0078125, %v275_v12  ;;  %v293_v14 = vmul.f32 %v1079_v10, %v1079_v10 }
 0x240   :  { %v1089_v26 = vsub.f32 %v261_v61, %v284_v19 }
 0x241   :  { %v287_v15 = vsub.f32 %v258_v62, %v283_v13  ;;  %299 = vadd.xlane.f32.xlu1 %v293_v14  ;;  %v472_v16 = vpop.xlane.xlu1 %471  ;;  %v535_v13 = vld [vmem:[#allocation5] sm:$0xff] }
 0x242   :  { %v477_v17 = vmul.f32 0.0078125, %v472_v16  ;;  %v281_v18 = vpop.xlane.xlu0 %280  ;;  %v292_v30 = vmul.f32 %v1089_v26, %v1089_v26 }
 0x243   :  { %v286_v20 = vmul.f32 0.0078125, %v281_v18  ;;  %v291_v21 = vmul.f32 %v287_v15, %v287_v15 }
 0x244   :  { %v1083_v22 = vsub.f32 %v459_v48, %v477_v17 }
 0x245   :  { %v1085_v23 = vsub.f32 %v269_v63, %v286_v20  ;;  %295 = vadd.xlane.f32.xlu1 %v291_v21  ;;  %v642_v63 = vld [vmem:[%s1148_s9] ss:$0 sm:$0xff] }
 0x246   :  { %v474_v24 = vpop.xlane.xlu0 %473  ;;  %v485_v25 = vmul.f32 %v1083_v22, %v1083_v22 }
 0x247   :  { %v478_v27 = vmul.f32 0.0078125, %v474_v24  ;;  %v294_v28 = vmul.f32 %v1085_v23, %v1085_v23 }
 0x249   :  { %491 = vadd.xlane.f32.xlu1 %v485_v25  ;;  %301 = vadd.xlane.f32.xlu0 %v294_v28  ;;  %v1093_v29 = vsub.f32 %v462_v52, %v478_v27  ;;  %v537_v25 = vld [vmem:[#allocation5 + $0x10] sm:$0xff] }
 0x24b   :  { %v486_v31 = vmul.f32 %v1093_v29, %v1093_v29 }
 0x24d   :  { %297 = vadd.xlane.f32.xlu0 %v292_v30 }
 0x251   :  { %493 = vadd.xlane.f32.xlu0 %v486_v31 }
 0x265   :  { %v488_v32 = vpop.xlane.xlu1 %487 }
 0x266   :  { %v495_v33 = vmul.f32 0.0078125, %v488_v32 }
 0x267   :  { %v490_v35 = vpop.xlane.xlu0 %489 }
 0x268   :  { %v499_v34 = vadd.f32 1e-12, %v495_v33  ;;  %v496_v38 = vmul.f32 0.0078125, %v490_v35 }
 0x26a   :  { %745 = vrsqrt.f32 %v499_v34  ;;  %v500_v42 = vadd.f32 1e-12, %v496_v38  ;;  %v536_v34 = vld [vmem:[#allocation5 + $0x8] sm:$0xff] }
 0x274   :  { %v746_v51 = vpop.eup %745 }
 0x275   :  { %v507_v56 = vmul.f32 %v746_v51, %v1071_v3 }
 0x277   :  { %v517_v1 = vmul.f32 %v653_v58, %v507_v56 }
 0x2ce   :  { %v300_v36 = vpop.xlane.xlu1 %299 }
 0x2cf   :  { %v305_v37 = vmul.f32 0.0078125, %v300_v36 }
 0x2d1   :  { %v309_v39 = vadd.f32 1e-12, %v305_v37 }
 0x2d2   :  { %v296_v40 = vpop.xlane.xlu1 %295 }
 0x2d3   :  { %v303_v41 = vmul.f32 0.0078125, %v296_v40  ;;  %747 = vrsqrt.f32 %v309_v39  ;;  %v538_v39 = vld [vmem:[#allocation5 + $0x18] sm:$0xff] }
 0x2d5   :  { %v307_v43 = vadd.f32 1e-12, %v303_v41 }
 0x2d6   :  { %v492_v44 = vpop.xlane.xlu1 %491  ;;  %v302_v45 = vpop.xlane.xlu0 %301 }
 0x2d7   :  { %749 = vrsqrt.f32 %v307_v43  ;;  %v497_v46 = vmul.f32 0.0078125, %v492_v44  ;;  %v306_v47 = vmul.f32 0.0078125, %v302_v45 }
 0x2d8   :  { %751 = vrsqrt.f32 %v500_v42 }
 0x2d9   :  { %v501_v48 = vadd.f32 1e-12, %v497_v46  ;;  %v310_v49 = vadd.f32 1e-12, %v306_v47 }
 0x2da   :  { %v298_v50 = vpop.xlane.xlu0 %297 }
 0x2db   :  { %753 = vrsqrt.f32 %v501_v48  ;;  %v304_v52 = vmul.f32 0.0078125, %v298_v50 }
 0x2dc   :  { %755 = vrsqrt.f32 %v310_v49 }
 0x2dd   :  { %v308_v53 = vadd.f32 1e-12, %v304_v52  ;;  %v748_v54 = vpop.eup %747 }
 0x2de   :  { %v494_v55 = vpop.xlane.xlu0 %493  ;;  %v317_v61 = vmul.f32 %v748_v54, %v1079_v10  ;;  %v527_v10 = vadd.f32 %v654_v2, %v517_v1 }
 0x2df   :  { %757 = vrsqrt.f32 %v308_v53  ;;  %v498_v57 = vmul.f32 0.0078125, %v494_v55 }
 0x2e0   :  { %v327_v7 = vmul.f32 %v642_v63, %v317_v61 }
 0x2e1   :  { %v750_v59 = vpop.eup %749  ;;  %v502_v60 = vadd.f32 1e-12, %v498_v57 }
 0x2e2   :  { %v752_v62 = vpop.eup %751  ;;  %v315_v0 = vmul.f32 %v750_v59, %v287_v15  ;;  %v337_v17 = vadd.f32 %v643_v6, %v327_v7 }
 0x2e3   :  { %759 = vrsqrt.f32 %v502_v60  ;;  %v508_v8 = vmul.f32 %v752_v62, %v1073_v5 }
 0x2e4   :  { %v325_v3 = vmul.f32 %v642_v63, %v315_v0 }
 0x2e5   :  { %v754_v4 = vpop.eup %753  ;;  %v518_v18 = vmul.f32 %v653_v58, %v508_v8  ;;  %v656_v8 = vld [vmem:[%s1153_s14] ss:$0 sm:$0xff] }
 0x2e6   :  { %v335_v9 = vadd.f32 %v643_v6, %v325_v3  ;;  %v509_v11 = vmul.f32 %v754_v4, %v1083_v22  ;;  %v756_v12 = vpop.eup %755 }
 0x2e7   :  { %v318_v24 = vmul.f32 %v756_v12, %v1085_v23  ;;  %v528_v30 = vadd.f32 %v654_v2, %v518_v18 }
 0x2e8   :  { %v531_v14 = vadd.f32 %v527_v10, %v335_v9  ;;  %v519_v15 = vmul.f32 %v653_v58, %v509_v11 }
 0x2e9   :  { %v758_v16 = vpop.eup %757  ;;  %v328_v32 = vmul.f32 %v642_v63, %v318_v24 }
 0x2ea   :  { %v539_v19 = vadd.f32 %v535_v13, %v531_v14  ;;  %v529_v20 = vadd.f32 %v654_v2, %v519_v15  ;;  %v316_v21 = vmul.f32 %v758_v16, %v1089_v26 }
 0x2eb   :  { %v338_v38 = vadd.f32 %v643_v6, %v328_v32 }
 0x2ec   :  { %545 = vadd.xlane.f32.xlu1 %v539_v19  ;;  %v533_v5 = vadd.f32 %v529_v20, %v337_v17  ;;  %v326_v27 = vmul.f32 %v642_v63, %v316_v21 }
 0x2ed   :  { %v760_v28 = vpop.eup %759 }
 0x2ee   :  { %v541_v22 = vadd.f32 %v537_v25, %v533_v5  ;;  %v336_v31 = vadd.f32 %v643_v6, %v326_v27  ;;  %v510_v33 = vmul.f32 %v760_v28, %v1093_v29  ;;  %v655_v6 = vld [vmem:[%s1152_s13] ss:$0 sm:$0xff]  ;;  %s896_s13 = smov [#allocation10]  }
 0x2ef   :  { %s618_s1 = sshll.u32 %s896_s13, 4  ;;  %s619_s1 = int_to_ptr.vmem [resolvable:$true] %s618_s1 }
 0x2f0   :  { %549 = vadd.xlane.f32.xlu1 %v541_v22  ;;  %v532_v35 = vadd.f32 %v528_v30, %v336_v31  ;;  %v520_v36 = vmul.f32 %v653_v58, %v510_v33  ;;  %s857_s14 = scalar_lea.vmem %s619_s1, 512  ;;  %p862_p5 = scmp.lt.s32.totalorder %s619_s1, %s619_s1 }
 0x2f1   :  { %p858_p4 = scmp.ne.s32.totalorder %s619_s1, %s857_s14  ;;  %p863_p6 = scmp.lt.s32.totalorder %s857_s14, %s857_s14 }
 0x2f2   :  { %v540_v37 = vadd.f32 %v536_v34, %v532_v35  ;;  %v530_v26 = vadd.f32 %v654_v2, %v520_v36 }
 0x2f3   :  { %p864_p7 = por %p863_p6, %p862_p5 }
 0x2f4   :  { %547 = vadd.xlane.f32.xlu0 %v540_v37  ;;  %v534_v23 = vadd.f32 %v530_v26, %v338_v38 }
 0x2f5   :  { %p865_p8 = pnand %p864_p7, %p858_p4 }
 0x2f6   :  { %v542_v40 = vadd.f32 %v538_v39, %v534_v23 }
 0x2f8   :  { %551 = vadd.xlane.f32.xlu0 %v542_v40 }
 0x379   :  { %v546_v41 = vpop.xlane.xlu1 %545 }
 0x37a   :  { %v553_v42 = vmul.f32 0.0078125, %v546_v41 }
 0x37c   :  { %v557_v43 = vsub.f32 %v539_v19, %v553_v42 }
 0x37d   :  { %v550_v44 = vpop.xlane.xlu1 %549 }
 0x37e   :  { %v555_v45 = vmul.f32 0.0078125, %v550_v44  ;;  %v561_v46 = vmul.f32 %v557_v43, %v557_v43 }
 0x380   :  { %v559_v47 = vsub.f32 %v541_v22, %v555_v45  ;;  %565 = vadd.xlane.f32.xlu1 %v561_v46 }
 0x381   :  { %v548_v29 = vpop.xlane.xlu0 %547 }
 0x382   :  { %v554_v48 = vmul.f32 0.0078125, %v548_v29  ;;  %v563_v49 = vmul.f32 %v559_v47, %v559_v47 }
 0x384   :  { %v558_v50 = vsub.f32 %v540_v37, %v554_v48  ;;  %569 = vadd.xlane.f32.xlu1 %v563_v49 }
 0x385   :  { %v552_v51 = vpop.xlane.xlu0 %551 }
 0x386   :  { %v556_v52 = vmul.f32 0.0078125, %v552_v51  ;;  %v562_v53 = vmul.f32 %v558_v50, %v558_v50 }
 0x388   :  { %v560_v54 = vsub.f32 %v542_v40, %v556_v52  ;;  %567 = vadd.xlane.f32.xlu0 %v562_v53 }
 0x38a   :  { %v564_v55 = vmul.f32 %v560_v54, %v560_v54 }
 0x38c   :  { %571 = vadd.xlane.f32.xlu0 %v564_v55 }
 0x40d   :  { %v566_v56 = vpop.xlane.xlu1 %565 }
 0x40e   :  { %v573_v57 = vmul.f32 0.0078125, %v566_v56 }
 0x410   :  { %v577_v58 = vadd.f32 1e-12, %v573_v57 }
 0x411   :  { %v570_v59 = vpop.xlane.xlu1 %569 }
 0x412   :  { %761 = vrsqrt.f32 %v577_v58  ;;  %v575_v60 = vmul.f32 0.0078125, %v570_v59 }
 0x414   :  { %v579_v61 = vadd.f32 1e-12, %v575_v60 }
 0x415   :  { %v568_v62 = vpop.xlane.xlu0 %567 }
 0x416   :  { %763 = vrsqrt.f32 %v579_v61  ;;  %v574_v63 = vmul.f32 0.0078125, %v568_v62 }
 0x418   :  { %v578_v0 = vadd.f32 1e-12, %v574_v63 }
 0x419   :  { %v572_v1 = vpop.xlane.xlu0 %571 }
 0x41a   :  { %765 = vrsqrt.f32 %v578_v0  ;;  %v576_v2 = vmul.f32 0.0078125, %v572_v1 }
 0x41c   :  { %v762_v3 = vpop.eup %761  ;;  %v580_v4 = vadd.f32 1e-12, %v576_v2 }
 0x41d   :  { %v585_v7 = vmul.f32 %v762_v3, %v557_v43 }
 0x41e   :  { %767 = vrsqrt.f32 %v580_v4 }
 0x41f   :  { %v595_v9 = vmul.f32 %v655_v6, %v585_v7 }
 0x420   :  { %v764_v10 = vpop.eup %763 }
 0x421   :  { %v587_v11 = vmul.f32 %v764_v10, %v559_v47  ;;  %v605_v12 = vadd.f32 %v656_v8, %v595_v9 }
 0x423   :  { %v597_v13 = vmul.f32 %v655_v6, %v587_v11  ;;  %609 = vst [vmem:[#allocation10] sm:$0xff] %v605_v12 }
 0x424   :  { %v766_v14 = vpop.eup %765 }
 0x425   :  { %v586_v15 = vmul.f32 %v766_v14, %v558_v50  ;;  %v607_v16 = vadd.f32 %v656_v8, %v597_v13 }
 0x427   :  { %v596_v17 = vmul.f32 %v655_v6, %v586_v15  ;;  %611 = vst [vmem:[#allocation10 + $0x10] sm:$0xff] %v607_v16 }
 0x428   :  { %v768_v18 = vpop.eup %767 }
 0x429   :  { %v588_v19 = vmul.f32 %v768_v18, %v560_v54  ;;  %v606_v20 = vadd.f32 %v656_v8, %v596_v17 }
 0x42b   :  { %v598_v21 = vmul.f32 %v655_v6, %v588_v19  ;;  %610 = vst [vmem:[#allocation10 + $0x8] sm:$0xff] %v606_v20 }
 0x42d   :  { %v608_v24 = vadd.f32 %v656_v8, %v598_v21 }
 0x42f   :  { %612 = vst [vmem:[#allocation10 + $0x18] sm:$0xff] %v608_v24 }
 0x430   :  { %868 = shalt.err (!%p865_p8)
}
 0x431   :  { %s869_s23 = scalar_lea.hbm %s1154_s15, 512 }
 0x432   :  { %p870_p9 = scmp.ne.s32.totalorder %s1154_s15, %s869_s23  ;;  %p873_p10 = scmp.lt.u32.totalorder %s869_s23, %s1154_s15 }
 0x434   :  { %p875_p11 = pnand %p873_p10, %p870_p9 }
 0x436   :  { %878 = shalt.err (!%p875_p11)
}
 0x437   :  { %624 = dma.vmem_to_hbm [thread:$0]  %s619_s1, 512, %s1154_s15, [#allocation4], %s889_s30, %s889_s30, %s890_s16  }
 0x438   :  { %885 = dma.done.wait [#allocation4], 512  }
 0x439   :  { %886 = vsyncadd [#allocation4], 4294966784 }
 0x43a   :  { %628 = vsyncpa [#allocation3], 1 }
 0x43b   :  { %629 = vsyncpa [#allocation6], 1 }
 0x43c   :  { %630 = vsyncpa [#allocation9], 1 }
 0x43d   :  { %631 = vsyncpa [#allocation4], 1 }

// kernel: tpu_custom_call.1
= control target key start
LH: loop header
LB: loop body
LE: loop exit
PB: predicated region body
PF: predicated region fallthrough
CT: control target
= control target key end

     0   :  { %20 = vsyncpa [#allocation3], 0  ;;  %s1139_s0 = inlined_call_operand.vmem [shape: f32[32,128], index: 0, kind: input, shape index: {}]   ;;  %s1140_s1 = inlined_call_operand.vmem [shape: f32[32,1], index: 1, kind: input, shape index: {}]   ;;  %s1141_s2 = inlined_call_operand.vmem [shape: f32[1,128], index: 2, kind: input, shape index: {}]   ;;  %s1142_s3 = inlined_call_operand.hbm [shape: f32[32,128], index: 3, kind: input, shape index: {}]   ;;  %s1143_s4 = inlined_call_operand.hbm [shape: f32[32,128], index: 4, kind: input, shape index: {}]   ;;  %s1144_s5 = inlined_call_operand.hbm [shape: bf16[128,128], index: 5, kind: input, shape index: {}]   ;;  %s1145_s6 = inlined_call_operand.vmem [shape: f32[1,128], index: 6, kind: input, shape index: {}]   ;;  %s1146_s7 = inlined_call_operand.hbm [shape: bf16[128,128], index: 7, kind: input, shape index: {}]   ;;  %s1147_s8 = inlined_call_operand.vmem [shape: f32[1,128], index: 8, kind: input, shape index: {}]   ;;  %s1148_s9 = inlined_call_operand.vmem [shape: f32[1,128], index: 9, kind: input, shape index: {}]   ;;  %s1149_s10 = inlined_call_operand.vmem [shape: f32[1,128], index: 10, kind: input, shape index: {}]   ;;  %s1150_s11 = inlined_call_operand.vmem [shape: f32[1,128], index: 11, kind: input, shape index: {}]   ;;  %s1151_s12 = inlined_call_operand.vmem [shape: f32[1,128], index: 12, kind: input, shape index: {}]   ;;  %s1152_s13 = inlined_call_operand.vmem [shape: f32[1,128], index: 13, kind: input, shape index: {}]   ;;  %s1153_s14 = inlined_call_operand.vmem [shape: f32[1,128], index: 14, kind: input, shape index: {}]   ;;  %s1154_s15 = inlined_call_operand.hbm [shape: f32[32,128], index: 15, kind: output, shape index: {}]  }
   0x1   :  { %21 = vsyncpa [#allocation6], 0 }
   0x2   :  { %22 = vsyncpa [#allocation9], 0 }
   0x3   :  { %23 = vsyncpa [#allocation4], 0  ;;  %s887_s18 = smov [#allocation5]   ;;  %s888_s20 = smov [#allocation2]  }
   0x4   :  { %s47_s19 = sshll.u32 %s887_s18, 4  ;;  %s35_s21 = sshll.u32 %s888_s20, 4  ;;  %s48_s19 = int_to_ptr.vmem [resolvable:$true] %s47_s19  ;;  %s977_s21 = int_to_ptr.vmem [resolvable:$true] %s35_s21 }
   0x5   :  { %s769_s24 = scalar_lea.hbm %s1143_s4, 512 }
   0x6   :  { %p770_p0 = scmp.ne.s32.totalorder %s1143_s4, %s769_s24  ;;  %p773_p1 = scmp.lt.u32.totalorder %s769_s24, %s1143_s4 }
   0x8   :  { %p775_p2 = pnand %p773_p1, %p770_p0 }
   0xa   :  { %778 = shalt.err (!%p775_p2)
}
   0xb   :  { %s779_s29 = scalar_lea.vmem %s48_s19, 512  ;;  %p784_p4 = scmp.lt.s32.totalorder %s48_s19, %s48_s19 }
   0xc   :  { %p780_p3 = scmp.ne.s32.totalorder %s48_s19, %s779_s29  ;;  %p785_p5 = scmp.lt.s32.totalorder %s779_s29, %s779_s29 }
   0xe   :  { %p786_p6 = por %p785_p5, %p784_p4 }
  0x10   :  { %p787_p7 = pnand %p786_p6, %p780_p3 }
  0x12   :  { %790 = shalt.err (!%p787_p7)
}
  0x13   :  { %s889_s30 = smov 128   ;;  %s890_s16 = smov 8  }
  0x14   :  { %53 = dma.hbm_to_vmem [thread:$0]  %s1143_s4, 512, %s48_s19, [#allocation6], %s889_s30, %s889_s30, %s890_s16  }
  0x15   :  { %s791_s23 = scalar_lea.hbm %s1142_s3, 512 }
  0x16   :  { %p792_p8 = scmp.ne.s32.totalorder %s1142_s3, %s791_s23  ;;  %p795_p9 = scmp.lt.u32.totalorder %s791_s23, %s1142_s3 }
  0x18   :  { %p797_p10 = pnand %p795_p9, %p792_p8 }
  0x1a   :  { %800 = shalt.err (!%p797_p10)
}
  0x1b   :  { %s801_s28 = scalar_lea.vmem %s977_s21, 512  ;;  %p806_p12 = scmp.lt.s32.totalorder %s977_s21, %s977_s21 }
  0x1c   :  { %p802_p11 = scmp.ne.s32.totalorder %s977_s21, %s801_s28  ;;  %p807_p13 = scmp.lt.s32.totalorder %s801_s28, %s801_s28 }
  0x1e   :  { %p808_p0 = por %p807_p13, %p806_p12 }
  0x20   :  { %p809_p1 = pnand %p808_p0, %p802_p11 }
  0x22   :  { %812 = shalt.err (!%p809_p1)
}
  0x23   :  { %41 = dma.hbm_to_vmem [thread:$0]  %s1142_s3, 512, %s977_s21, [#allocation3], %s889_s30, %s889_s30, %s890_s16  }
  0x24   :  { %s891_s29 = smov [#allocation7]   ;;  %s813_s22 = scalar_lea.hbm %s1144_s5, 1024 }
  0x25   :  { %s59_s17 = sshll.u32 %s891_s29, 4  ;;  %p814_p2 = scmp.ne.s32.totalorder %s1144_s5, %s813_s22  ;;  %s60_s17 = int_to_ptr.vmem [resolvable:$true] %s59_s17 }
  0x26   :  { %p817_p3 = scmp.lt.u32.totalorder %s813_s22, %s1144_s5 }
  0x28   :  { %p819_p4 = pnand %p817_p3, %p814_p2 }
  0x2a   :  { %822 = shalt.err (!%p819_p4)
}
  0x2b   :  { %s823_s27 = scalar_lea.vmem %s60_s17, 1024  ;;  %p828_p6 = scmp.lt.s32.totalorder %s60_s17, %s60_s17 }
  0x2c   :  { %p824_p5 = scmp.ne.s32.totalorder %s60_s17, %s823_s27  ;;  %p829_p7 = scmp.lt.s32.totalorder %s823_s27, %s823_s27 }
  0x2e   :  { %p830_p8 = por %p829_p7, %p828_p6 }
  0x30   :  { %p831_p9 = pnand %p830_p8, %p824_p5 }
  0x32   :  { %834 = shalt.err (!%p831_p9)
}
  0x33   :  { %s892_s3 = smov 64   ;;  %s893_s21 = smov 4  }
  0x34   :  { %65 = dma.hbm_to_vmem [thread:$0]  %s1144_s5, 1024, %s60_s17, [#allocation6], %s892_s3, %s892_s3, %s893_s21  }
  0x35   :  { %s894_s19 = smov [#allocation8]   ;;  %s835_s22 = scalar_lea.hbm %s1146_s7, 1024 }
  0x36   :  { %s73_s29 = sshll.u32 %s894_s19, 4  ;;  %p836_p10 = scmp.ne.s32.totalorder %s1146_s7, %s835_s22  ;;  %s74_s29 = int_to_ptr.vmem [resolvable:$true] %s73_s29 }
  0x37   :  { %p839_p11 = scmp.lt.u32.totalorder %s835_s22, %s1146_s7 }
  0x39   :  { %p841_p12 = pnand %p839_p11, %p836_p10 }
  0x3b   :  { %844 = shalt.err (!%p841_p12)
}
  0x3c   :  { %s845_s27 = scalar_lea.vmem %s74_s29, 1024  ;;  %p850_p0 = scmp.lt.s32.totalorder %s74_s29, %s74_s29 }
  0x3d   :  { %p846_p13 = scmp.ne.s32.totalorder %s74_s29, %s845_s27  ;;  %p851_p1 = scmp.lt.s32.totalorder %s845_s27, %s845_s27 }
  0x3f   :  { %p852_p2 = por %p851_p1, %p850_p0 }
  0x41   :  { %p853_p3 = pnand %p852_p2, %p846_p13 }
  0x43   :  { %856 = shalt.err (!%p853_p3)
}
  0x44   :  { %79 = dma.hbm_to_vmem [thread:$0]  %s1146_s7, 1024, %s74_s29, [#allocation9], %s892_s3, %s892_s3, %s893_s21  }
  0x45   :  { %879 = dma.done.wait [#allocation3], 512  }
  0x46   :  { %880 = vsyncadd [#allocation3], 4294966784 }
  0x47   :  { %881 = dma.done.wait [#allocation6], 1536  }
  0x48   :  { %882 = vsyncadd [#allocation6], 4294965760 }
  0x49   :  { %883 = dma.done.wait [#allocation9], 1024  }
  0x4a   :  { %884 = vsyncadd [#allocation9], 4294966272  ;;  %v895_v0 = vmov 0   ;;  %v113_v1 = vld [vmem:[%s1140_s1 + $0x10] sm:$0xff]  ;;  %v111_v2 = vld [vmem:[%s1140_s1] sm:$0xff] }
  0x4b   :  { %728 = vset.pattern.permute.xlu1 %v895_v0  ;;  %727 = vset.pattern.permute.xlu0 %v895_v0  ;;  %v729_v3 = vld [vmem:[#allocation8] sm:$0xff]   ;;  %v114_v4 = vld [vmem:[%s1140_s1 + $0x18] sm:$0xff]  ;;  %v112_v5 = vld [vmem:[%s1140_s1 + $0x8] sm:$0xff] }
  0x4c   :  { %128 = vperm.xlu1 %728, %v113_v1   ;;  %118 = vperm.xlu0 %727, %v111_v2   ;;  %v730_v6 = vld [vmem:[#allocation8 + $0x8] sm:$0xff]   ;;  %v731_v7 = vld [vmem:[#allocation8 + $0x10] sm:$0xff]   ;;  %v732_v8 = vld [vmem:[#allocation8 + $0x18] sm:$0xff]  }
  0x4d   :  { %697 = vmatprep.subr.bf16.mxu1 %v729_v3  ;;  %v339_v9 = vld [vmem:[#allocation2] sm:$0xff]  ;;  %v340_v10 = vld [vmem:[#allocation2 + $0x8] sm:$0xff]  ;;  %v739_v15 = vld [vmem:[#allocation7 + $0x10] sm:$0xff]  }
  0x4e   :  { %698 = vmatpush3.bf16.msra.mxu1 %v729_v3  ;;  %v343_v11 = vpack.c.bf16 %v340_v10, %v339_v9  ;;  %v737_v12 = vld [vmem:[#allocation7] sm:$0xff]   ;;  %v738_v13 = vld [vmem:[#allocation7 + $0x8] sm:$0xff]   ;;  %v740_v17 = vld [vmem:[#allocation7 + $0x18] sm:$0xff]  }
  0x4f   :  { %699 = vmatprep.subr.bf16.mxu1 %v730_v6  ;;  %v733_v14 = vld [vmem:[#allocation8 + $0x20] sm:$0xff]   ;;  %677 = vmatprep.subr.bf16.mxu0 %v737_v12  ;;  %v734_v16 = vld [vmem:[#allocation8 + $0x28] sm:$0xff]   ;;  %v735_v18 = vld [vmem:[#allocation8 + $0x30] sm:$0xff]  }
  0x50   :  { %133 = vperm.xlu1 %728, %v114_v4   ;;  %123 = vperm.xlu0 %727, %v112_v5   ;;  %v741_v19 = vld [vmem:[#allocation7 + $0x20] sm:$0xff]   ;;  %v736_v20 = vld [vmem:[#allocation8 + $0x38] sm:$0xff]   ;;  %v742_v21 = vld [vmem:[#allocation7 + $0x28] sm:$0xff]  }
  0x51   :  { %713 = vmatprep.mubr.bf16.mxu1 %v343_v11  ;;  %678 = vmatpush3.bf16.msra.mxu0 %v737_v12  ;;  %v341_v22 = vld [vmem:[#allocation2 + $0x10] sm:$0xff]  ;;  %v342_v23 = vld [vmem:[#allocation2 + $0x18] sm:$0xff]  ;;  %v632_v27 = vld [vmem:[%s1141_s2] ss:$0 sm:$0xff] }
  0x52   :  { %700 = vmatpush3.bf16.msra.mxu1 %v730_v6  ;;  %679 = vmatprep.subr.bf16.mxu0 %v738_v13  ;;  %v344_v24 = vpack.c.bf16 %v342_v23, %v341_v22  ;;  %v743_v25 = vld [vmem:[#allocation7 + $0x30] sm:$0xff]   ;;  %v744_v26 = vld [vmem:[#allocation7 + $0x38] sm:$0xff]   ;;  %v107_v36 = vld [vmem:[%s1139_s0] sm:$0xff] }
  0x53   :  { %701 = vmatprep.subr.bf16.mxu1 %v731_v7  ;;  %v109_v30 = vld [vmem:[%s1139_s0 + $0x10] sm:$0xff]  ;;  %v110_v34 = vld [vmem:[%s1139_s0 + $0x18] sm:$0xff]  ;;  %v108_v37 = vld [vmem:[%s1139_s0 + $0x8] sm:$0xff] }
  0x54   :  { %v644_v46 = vld [vmem:[%s1147_s8] ss:$0 sm:$0xff] }
  0x55   :  { %680 = vmatpush3.bf16.msra.mxu0 %v738_v13  ;;  %v633_v55 = vld [vmem:[%s1145_s6] ss:$0 sm:$0xff] }
  0x56   :  { %702 = vmatpush3.bf16.msra.mxu1 %v731_v7  ;;  %681 = vmatprep.subr.bf16.mxu0 %v739_v15 }
  0x57   :  { %703 = vmatprep.subr.bf16.mxu1 %v732_v8 }
  0x59   :  { %682 = vmatpush3.bf16.msra.mxu0 %v739_v15 }
  0x5a   :  { %704 = vmatpush3.bf16.msra.mxu1 %v732_v8  ;;  %683 = vmatprep.subr.bf16.mxu0 %v740_v17 }
  0x5b   :  { %705 = vmatprep.subr.bf16.mxu1 %v733_v14 }
  0x5d   :  { %684 = vmatpush3.bf16.msra.mxu0 %v740_v17 }
  0x5e   :  { %706 = vmatpush3.bf16.msra.mxu1 %v733_v14  ;;  %685 = vmatprep.subr.bf16.mxu0 %v741_v19 }
  0x5f   :  { %707 = vmatprep.subr.bf16.mxu1 %v734_v16 }
  0x61   :  { %686 = vmatpush3.bf16.msra.mxu0 %v741_v19 }
  0x62   :  { %708 = vmatpush3.bf16.msra.mxu1 %v734_v16  ;;  %687 = vmatprep.subr.bf16.mxu0 %v742_v21 }
  0x63   :  { %709 = vmatprep.subr.bf16.mxu1 %v735_v18 }
  0x65   :  { %688 = vmatpush3.bf16.msra.mxu0 %v742_v21 }
  0x66   :  { %710 = vmatpush3.bf16.msra.mxu1 %v735_v18  ;;  %689 = vmatprep.subr.bf16.mxu0 %v743_v25 }
  0x67   :  { %711 = vmatprep.subr.bf16.mxu1 %v736_v20 }
  0x69   :  { %690 = vmatpush3.bf16.msra.mxu0 %v743_v25 }
  0x6a   :  { %712 = vmatpush3.bf16.msra.mxu1 %v736_v20  ;;  %691 = vmatprep.subr.bf16.mxu0 %v744_v26 }
  0x6d   :  { %714 = vmatmul.mubr.bf16.vlgmr.msra.gmra.mrb[0].mxu1 %v344_v24  ;;  %692 = vmatpush3.bf16.msra.mxu0 %v744_v26 }
  0xcb   :  { %v129_v28 = vpop.permute.xlu1 %128  ;;  %v119_v29 = vpop.permute.xlu0 %118 }
  0xcc   :  { %v144_v31 = vmul.f32 %v632_v27, %v129_v28  ;;  %v142_v32 = vmul.f32 %v632_v27, %v119_v29 }
  0xce   :  { %v148_v40 = vadd.f32 %v144_v31, %v109_v30  ;;  %v146_v42 = vadd.f32 %v142_v32, %v107_v36 }
  0xcf   :  { %v134_v33 = vpop.permute.xlu1 %133  ;;  %v124_v35 = vpop.permute.xlu0 %123 }
  0xd0   :  { %v145_v38 = vmul.f32 %v632_v27, %v134_v33  ;;  %v143_v39 = vmul.f32 %v632_v27, %v124_v35 }
  0xd2   :  { %v149_v41 = vadd.f32 %v145_v38, %v110_v34  ;;  %v147_v43 = vadd.f32 %v143_v39, %v108_v37 }
  0xd4   :  { %v150_v44 = vpack.c.bf16 %v147_v43, %v146_v42  ;;  %v151_v45 = vpack.c.bf16 %v149_v41, %v148_v40 }
  0xd6   :  { %693 = vmatprep.mubr.bf16.mxu0 %v150_v44 }
  0xd7   :  { %694 = vmatmul.mubr.bf16.vlgmr.msra.gmra.mrb[0].mxu0 %v151_v45 }
 0x140   :  { %v715_v47 = vpop.f32.mrb[0].mxu1 }
 0x141   :  { %v459_v48 = vadd.f32 %v715_v47, %v644_v46  ;;  %v450_v49 = vpop.f32.mrb[1].mxu1 }
 0x142   :  { %v451_v50 = vadd.f32 %v644_v46, %v450_v49  ;;  %v716_v51 = vpop.f32.mrb[2].mxu1 }
 0x143   :  { %v462_v52 = vadd.f32 %v716_v51, %v644_v46  ;;  %v453_v53 = vpop.f32.mrb[3].mxu1 }
 0x144   :  { %v454_v54 = vadd.f32 %v644_v46, %v453_v53  ;;  %467 = vadd.xlane.f32.xlu1 %v451_v50 }
 0x146   :  { %469 = vadd.xlane.f32.xlu0 %v454_v54 }
 0x1aa   :  { %v695_v56 = vpop.f32.mrb[0].mxu0 }
 0x1ab   :  { %v266_v57 = vadd.f32 %v695_v56, %v633_v55  ;;  %v257_v58 = vpop.f32.mrb[1].mxu0 }
 0x1ac   :  { %v696_v59 = vpop.f32.mrb[2].mxu0  ;;  %v258_v62 = vadd.f32 %v633_v55, %v257_v58  ;;  %v653_v58 = vld [vmem:[%s1150_s11] ss:$0 sm:$0xff] }
 0x1ad   :  { %278 = vadd.xlane.f32.xlu0 %v266_v57  ;;  %v260_v60 = vpop.f32.mrb[3].mxu0  ;;  %v269_v63 = vadd.f32 %v696_v59, %v633_v55 }
 0x1ae   :  { %v261_v61 = vadd.f32 %v633_v55, %v260_v60 }
 0x1b0   :  { %276 = vadd.xlane.f32.xlu1 %v261_v61 }
 0x1b1   :  { %274 = vadd.xlane.f32.xlu0 %v258_v62 }
 0x1b4   :  { %471 = vadd.xlane.f32.xlu1 %v459_v48 }
 0x1b5   :  { %280 = vadd.xlane.f32.xlu0 %v269_v63 }
 0x1b9   :  { %473 = vadd.xlane.f32.xlu0 %v462_v52 }
 0x1d1   :  { %v468_v0 = vpop.xlane.xlu1 %467 }
 0x1d2   :  { %v475_v1 = vmul.f32 0.0078125, %v468_v0 }
 0x1d3   :  { %v470_v2 = vpop.xlane.xlu0 %469 }
 0x1d4   :  { %v1071_v3 = vsub.f32 %v451_v50, %v475_v1  ;;  %v476_v4 = vmul.f32 0.0078125, %v470_v2  ;;  %v654_v2 = vld [vmem:[%s1151_s12] ss:$0 sm:$0xff] }
 0x1d6   :  { %v1073_v5 = vsub.f32 %v454_v54, %v476_v4  ;;  %v483_v6 = vmul.f32 %v1071_v3, %v1071_v3 }
 0x1d8   :  { %487 = vadd.xlane.f32.xlu1 %v483_v6  ;;  %v484_v7 = vmul.f32 %v1073_v5, %v1073_v5  ;;  %v643_v6 = vld [vmem:[%s1149_s10] ss:$0 sm:$0xff] }
 0x1da   :  { %489 = vadd.xlane.f32.xlu0 %v484_v7 }
 0x23a   :  { %v279_v8 = vpop.xlane.xlu0 %278 }
 0x23b   :  { %v285_v9 = vmul.f32 0.0078125, %v279_v8 }
 0x23d   :  { %v1079_v10 = vsub.f32 %v266_v57, %v285_v9  ;;  %v277_v11 = vpop.xlane.xlu1 %276 }
 0x23e   :  { %v275_v12 = vpop.xlane.xlu0 %274  ;;  %v284_v19 = vmul.f32 0.0078125, %v277_v11 }
 0x23f   :  { %v283_v13 = vmul.f32 0.0078125, %v275_v12  ;;  %v293_v14 = vmul.f32 %v1079_v10, %v1079_v10 }
 0x240   :  { %v1089_v26 = vsub.f32 %v261_v61, %v284_v19 }
 0x241   :  { %v287_v15 = vsub.f32 %v258_v62, %v283_v13  ;;  %299 = vadd.xlane.f32.xlu1 %v293_v14  ;;  %v472_v16 = vpop.xlane.xlu1 %471  ;;  %v535_v13 = vld [vmem:[#allocation5] sm:$0xff] }
 0x242   :  { %v477_v17 = vmul.f32 0.0078125, %v472_v16  ;;  %v281_v18 = vpop.xlane.xlu0 %280  ;;  %v292_v30 = vmul.f32 %v1089_v26, %v1089_v26 }
 0x243   :  { %v286_v20 = vmul.f32 0.0078125, %v281_v18  ;;  %v291_v21 = vmul.f32 %v287_v15, %v287_v15 }
 0x244   :  { %v1083_v22 = vsub.f32 %v459_v48, %v477_v17 }
 0x245   :  { %v1085_v23 = vsub.f32 %v269_v63, %v286_v20  ;;  %295 = vadd.xlane.f32.xlu1 %v291_v21  ;;  %v642_v63 = vld [vmem:[%s1148_s9] ss:$0 sm:$0xff] }
 0x246   :  { %v474_v24 = vpop.xlane.xlu0 %473  ;;  %v485_v25 = vmul.f32 %v1083_v22, %v1083_v22 }
 0x247   :  { %v478_v27 = vmul.f32 0.0078125, %v474_v24  ;;  %v294_v28 = vmul.f32 %v1085_v23, %v1085_v23 }
 0x249   :  { %491 = vadd.xlane.f32.xlu1 %v485_v25  ;;  %301 = vadd.xlane.f32.xlu0 %v294_v28  ;;  %v1093_v29 = vsub.f32 %v462_v52, %v478_v27  ;;  %v537_v25 = vld [vmem:[#allocation5 + $0x10] sm:$0xff] }
 0x24b   :  { %v486_v31 = vmul.f32 %v1093_v29, %v1093_v29 }
 0x24d   :  { %297 = vadd.xlane.f32.xlu0 %v292_v30 }
 0x251   :  { %493 = vadd.xlane.f32.xlu0 %v486_v31 }
 0x265   :  { %v488_v32 = vpop.xlane.xlu1 %487 }
 0x266   :  { %v495_v33 = vmul.f32 0.0078125, %v488_v32 }
 0x267   :  { %v490_v35 = vpop.xlane.xlu0 %489 }
 0x268   :  { %v499_v34 = vadd.f32 1e-12, %v495_v33  ;;  %v496_v38 = vmul.f32 0.0078125, %v490_v35 }
 0x26a   :  { %745 = vrsqrt.f32 %v499_v34  ;;  %v500_v42 = vadd.f32 1e-12, %v496_v38  ;;  %v536_v34 = vld [vmem:[#allocation5 + $0x8] sm:$0xff] }
 0x274   :  { %v746_v51 = vpop.eup %745 }
 0x275   :  { %v507_v56 = vmul.f32 %v746_v51, %v1071_v3 }
 0x277   :  { %v517_v1 = vmul.f32 %v653_v58, %v507_v56 }
 0x2ce   :  { %v300_v36 = vpop.xlane.xlu1 %299 }
 0x2cf   :  { %v305_v37 = vmul.f32 0.0078125, %v300_v36 }
 0x2d1   :  { %v309_v39 = vadd.f32 1e-12, %v305_v37 }
 0x2d2   :  { %v296_v40 = vpop.xlane.xlu1 %295 }
 0x2d3   :  { %v303_v41 = vmul.f32 0.0078125, %v296_v40  ;;  %747 = vrsqrt.f32 %v309_v39  ;;  %v538_v39 = vld [vmem:[#allocation5 + $0x18] sm:$0xff] }
 0x2d5   :  { %v307_v43 = vadd.f32 1e-12, %v303_v41 }
 0x2d6   :  { %v492_v44 = vpop.xlane.xlu1 %491  ;;  %v302_v45 = vpop.xlane.xlu0 %301 }
 0x2d7   :  { %749 = vrsqrt.f32 %v307_v43  ;;  %v497_v46 = vmul.f32 0.0078125, %v492_v44  ;;  %v306_v47 = vmul.f32 0.0078125, %v302_v45 }
 0x2d8   :  { %751 = vrsqrt.f32 %v500_v42 }
 0x2d9   :  { %v501_v48 = vadd.f32 1e-12, %v497_v46  ;;  %v310_v49 = vadd.f32 1e-12, %v306_v47 }
 0x2da   :  { %v298_v50 = vpop.xlane.xlu0 %297 }
 0x2db   :  { %753 = vrsqrt.f32 %v501_v48  ;;  %v304_v52 = vmul.f32 0.0078125, %v298_v50 }
 0x2dc   :  { %755 = vrsqrt.f32 %v310_v49 }
 0x2dd   :  { %v308_v53 = vadd.f32 1e-12, %v304_v52  ;;  %v748_v54 = vpop.eup %747 }
 0x2de   :  { %v494_v55 = vpop.xlane.xlu0 %493  ;;  %v317_v61 = vmul.f32 %v748_v54, %v1079_v10  ;;  %v527_v10 = vadd.f32 %v654_v2, %v517_v1 }
 0x2df   :  { %757 = vrsqrt.f32 %v308_v53  ;;  %v498_v57 = vmul.f32 0.0078125, %v494_v55 }
 0x2e0   :  { %v327_v7 = vmul.f32 %v642_v63, %v317_v61 }
 0x2e1   :  { %v750_v59 = vpop.eup %749  ;;  %v502_v60 = vadd.f32 1e-12, %v498_v57 }
 0x2e2   :  { %v752_v62 = vpop.eup %751  ;;  %v315_v0 = vmul.f32 %v750_v59, %v287_v15  ;;  %v337_v17 = vadd.f32 %v643_v6, %v327_v7 }
 0x2e3   :  { %759 = vrsqrt.f32 %v502_v60  ;;  %v508_v8 = vmul.f32 %v752_v62, %v1073_v5 }
 0x2e4   :  { %v325_v3 = vmul.f32 %v642_v63, %v315_v0 }
 0x2e5   :  { %v754_v4 = vpop.eup %753  ;;  %v518_v18 = vmul.f32 %v653_v58, %v508_v8  ;;  %v656_v8 = vld [vmem:[%s1153_s14] ss:$0 sm:$0xff] }
 0x2e6   :  { %v335_v9 = vadd.f32 %v643_v6, %v325_v3  ;;  %v509_v11 = vmul.f32 %v754_v4, %v1083_v22  ;;  %v756_v12 = vpop.eup %755 }
 0x2e7   :  { %v318_v24 = vmul.f32 %v756_v12, %v1085_v23  ;;  %v528_v30 = vadd.f32 %v654_v2, %v518_v18 }
 0x2e8   :  { %v531_v14 = vadd.f32 %v527_v10, %v335_v9  ;;  %v519_v15 = vmul.f32 %v653_v58, %v509_v11 }
 0x2e9   :  { %v758_v16 = vpop.eup %757  ;;  %v328_v32 = vmul.f32 %v642_v63, %v318_v24 }
 0x2ea   :  { %v539_v19 = vadd.f32 %v535_v13, %v531_v14  ;;  %v529_v20 = vadd.f32 %v654_v2, %v519_v15  ;;  %v316_v21 = vmul.f32 %v758_v16, %v1089_v26 }
 0x2eb   :  { %v338_v38 = vadd.f32 %v643_v6, %v328_v32 }
 0x2ec   :  { %545 = vadd.xlane.f32.xlu1 %v539_v19  ;;  %v533_v5 = vadd.f32 %v529_v20, %v337_v17  ;;  %v326_v27 = vmul.f32 %v642_v63, %v316_v21 }
 0x2ed   :  { %v760_v28 = vpop.eup %759 }
 0x2ee   :  { %v541_v22 = vadd.f32 %v537_v25, %v533_v5  ;;  %v336_v31 = vadd.f32 %v643_v6, %v326_v27  ;;  %v510_v33 = vmul.f32 %v760_v28, %v1093_v29  ;;  %v655_v6 = vld [vmem:[%s1152_s13] ss:$0 sm:$0xff]  ;;  %s896_s13 = smov [#allocation10]  }
 0x2ef   :  { %s618_s1 = sshll.u32 %s896_s13, 4  ;;  %s619_s1 = int_to_ptr.vmem [resolvable:$true] %s618_s1 }
 0x2f0   :  { %549 = vadd.xlane.f32.xlu1 %v541_v22  ;;  %v532_v35 = vadd.f32 %v528_v30, %v336_v31  ;;  %v520_v36 = vmul.f32 %v653_v58, %v510_v33  ;;  %s857_s14 = scalar_lea.vmem %s619_s1, 512  ;;  %p862_p5 = scmp.lt.s32.totalorder %s619_s1, %s619_s1 }
 0x2f1   :  { %p858_p4 = scmp.ne.s32.totalorder %s619_s1, %s857_s14  ;;  %p863_p6 = scmp.lt.s32.totalorder %s857_s14, %s857_s14 }
 0x2f2   :  { %v540_v37 = vadd.f32 %v536_v34, %v532_v35  ;;  %v530_v26 = vadd.f32 %v654_v2, %v520_v36 }
 0x2f3   :  { %p864_p7 = por %p863_p6, %p862_p5 }
 0x2f4   :  { %547 = vadd.xlane.f32.xlu0 %v540_v37  ;;  %v534_v23 = vadd.f32 %v530_v26, %v338_v38 }
 0x2f5   :  { %p865_p8 = pnand %p864_p7, %p858_p4 }
 0x2f6   :  { %v542_v40 = vadd.f32 %v538_v39, %v534_v23 }
 0x2f8   :  { %551 = vadd.xlane.f32.xlu0 %v542_v40 }
 0x379   :  { %v546_v41 = vpop.xlane.xlu1 %545 }
 0x37a   :  { %v553_v42 = vmul.f32 0.0078125, %v546_v41 }
 0x37c   :  { %v557_v43 = vsub.f32 %v539_v19, %v553_v42 }
 0x37d   :  { %v550_v44 = vpop.xlane.xlu1 %549 }
 0x37e   :  { %v555_v45 = vmul.f32 0.0078125, %v550_v44  ;;  %v561_v46 = vmul.f32 %v557_v43, %v557_v43 }
 0x380   :  { %v559_v47 = vsub.f32 %v541_v22, %v555_v45  ;;  %565 = vadd.xlane.f32.xlu1 %v561_v46 }
 0x381   :  { %v548_v29 = vpop.xlane.xlu0 %547 }
 0x382   :  { %v554_v48 = vmul.f32 0.0078125, %v548_v29  ;;  %v563_v49 = vmul.f32 %v559_v47, %v559_v47 }
 0x384   :  { %v558_v50 = vsub.f32 %v540_v37, %v554_v48  ;;  %569 = vadd.xlane.f32.xlu1 %v563_v49 }
 0x385   :  { %v552_v51 = vpop.xlane.xlu0 %551 }
 0x386   :  { %v556_v52 = vmul.f32 0.0078125, %v552_v51  ;;  %v562_v53 = vmul.f32 %v558_v50, %v558_v50 }
 0x388   :  { %v560_v54 = vsub.f32 %v542_v40, %v556_v52  ;;  %567 = vadd.xlane.f32.xlu0 %v562_v53 }
 0x38a   :  { %v564_v55 = vmul.f32 %v560_v54, %v560_v54 }
 0x38c   :  { %571 = vadd.xlane.f32.xlu0 %v564_v55 }
 0x40d   :  { %v566_v56 = vpop.xlane.xlu1 %565 }
 0x40e   :  { %v573_v57 = vmul.f32 0.0078125, %v566_v56 }
 0x410   :  { %v577_v58 = vadd.f32 1e-12, %v573_v57 }
 0x411   :  { %v570_v59 = vpop.xlane.xlu1 %569 }
 0x412   :  { %761 = vrsqrt.f32 %v577_v58  ;;  %v575_v60 = vmul.f32 0.0078125, %v570_v59 }
 0x414   :  { %v579_v61 = vadd.f32 1e-12, %v575_v60 }
 0x415   :  { %v568_v62 = vpop.xlane.xlu0 %567 }
 0x416   :  { %763 = vrsqrt.f32 %v579_v61  ;;  %v574_v63 = vmul.f32 0.0078125, %v568_v62 }
 0x418   :  { %v578_v0 = vadd.f32 1e-12, %v574_v63 }
 0x419   :  { %v572_v1 = vpop.xlane.xlu0 %571 }
 0x41a   :  { %765 = vrsqrt.f32 %v578_v0  ;;  %v576_v2 = vmul.f32 0.0078125, %v572_v1 }
 0x41c   :  { %v762_v3 = vpop.eup %761  ;;  %v580_v4 = vadd.f32 1e-12, %v576_v2 }
 0x41d   :  { %v585_v7 = vmul.f32 %v762_v3, %v557_v43 }
 0x41e   :  { %767 = vrsqrt.f32 %v580_v4 }
 0x41f   :  { %v595_v9 = vmul.f32 %v655_v6, %v585_v7 }
 0x420   :  { %v764_v10 = vpop.eup %763 }
 0x421   :  { %v587_v11 = vmul.f32 %v764_v10, %v559_v47  ;;  %v605_v12 = vadd.f32 %v656_v8, %v595_v9 }
 0x423   :  { %v597_v13 = vmul.f32 %v655_v6, %v587_v11  ;;  %609 = vst [vmem:[#allocation10] sm:$0xff] %v605_v12 }
 0x424   :  { %v766_v14 = vpop.eup %765 }
 0x425   :  { %v586_v15 = vmul.f32 %v766_v14, %v558_v50  ;;  %v607_v16 = vadd.f32 %v656_v8, %v597_v13 }
 0x427   :  { %v596_v17 = vmul.f32 %v655_v6, %v586_v15  ;;  %611 = vst [vmem:[#allocation10 + $0x10] sm:$0xff] %v607_v16 }
 0x428   :  { %v768_v18 = vpop.eup %767 }
 0x429   :  { %v588_v19 = vmul.f32 %v768_v18, %v560_v54  ;;  %v606_v20 = vadd.f32 %v656_v8, %v596_v17 }
 0x42b   :  { %v598_v21 = vmul.f32 %v655_v6, %v588_v19  ;;  %610 = vst [vmem:[#allocation10 + $0x8] sm:$0xff] %v606_v20 }
 0x42d   :  { %v608_v24 = vadd.f32 %v656_v8, %v598_v21 }
 0x42f   :  { %612 = vst [vmem:[#allocation10 + $0x18] sm:$0xff] %v608_v24 }
 0x430   :  { %868 = shalt.err (!%p865_p8)
}
 0x431   :  { %s869_s23 = scalar_lea.hbm %s1154_s15, 512 }
 0x432   :  { %p870_p9 = scmp.ne.s32.totalorder %s1154_s15, %s869_s23  ;;  %p873_p10 = scmp.lt.u32.totalorder %s869_s23, %s1154_s15 }
 0x434   :  { %p875_p11 = pnand %p873_p10, %p870_p9 }
 0x436   :  { %878 = shalt.err (!%p875_p11)
}
 0x437   :  { %624 = dma.vmem_to_hbm [thread:$0]  %s619_s1, 512, %s1154_s15, [#allocation4], %s889_s30, %s889_s30, %s890_s16  }
 0x438   :  { %885 = dma.done.wait [#allocation4], 512  }
 0x439   :  { %886 = vsyncadd [#allocation4], 4294966784 }
 0x43a   :  { %628 = vsyncpa [#allocation3], 1 }
 0x43b   :  { %629 = vsyncpa [#allocation6], 1 }
 0x43c   :  { %630 = vsyncpa [#allocation9], 1 }
 0x43d   :  { %631 = vsyncpa [#allocation4], 1 }

</bundles_post_ra>
